<compile_context>
chip_gen: v7x
topology: tpu7x:2x2x1
jax: 0.10.0
libtpu: 0.0.40
codegen_flags: <defaults>
</compile_context>

<pallas_src>
import jax
import jax.numpy as jnp
from jax.experimental import pallas as pl
from jax.experimental.pallas import tpu as pltpu


def _round_up(x, m):
    return (x + m - 1) // m * m


def encoder4layers_kernel(x_ref,
                          w1_ref, b1_ref,
                          w2_ref, b2_ref,
                          w3_ref, b3_ref,
                          wh_ref, bh_ref,
                          out_ref):
    # x tile: (TM, D_in) bf16. MXU accumulates in f32; bias add + relu in f32
    # (v5e has no bf16 VPU path); cast back to the weight dtype only to feed
    # the next MXU push.
    wdt = w1_ref.dtype

    h = jnp.dot(x_ref[...], w1_ref[...],
                preferred_element_type=jnp.float32) + b1_ref[...]
    h = jnp.maximum(h, 0.0)                                  # (TM, 512) f32

    h = jnp.dot(h.astype(wdt), w2_ref[...],
                preferred_element_type=jnp.float32) + b2_ref[...]
    h = jnp.maximum(h, 0.0)                                  # (TM, 256) f32

    h = jnp.dot(h.astype(wdt), w3_ref[...],
                preferred_element_type=jnp.float32) + b3_ref[...]
    h = jnp.maximum(h, 0.0)                                  # (TM, 128) f32

    # Fused mu|logvar head -> one lane-dense (>=128 wide) output slab.
    out = jnp.dot(h.astype(wdt), wh_ref[...],
                  preferred_element_type=jnp.float32) + bh_ref[...]
    out_ref[...] = out.astype(out_ref.dtype)


def encoder4layers_forward(x, params, *, compute_dtype=jnp.bfloat16, tm=512):
    """x: (B, C, H, W) float32. Returns (mu, log_var), each (B, latent_dims) f32."""
    B = x.shape[0]
    x_flat = x.reshape(B, -1)                       # glue: torch.flatten(x, 1)
    d_in = x_flat.shape[1]

    (w1, b1), (w2, b2), (w3, b3), (w4, b4), (w5, b5) = params
    latent = w4.shape[1]

    # --- Fuse the two heads; pad fused output dim up to a multiple of 128.
    wh = jnp.concatenate([w4, w5], axis=1)          # (128, 2L)
    bh = jnp.concatenate([b4, b5], axis=1)          # (1, 2L)
    head = 2 * latent
    head_pad = _round_up(max(head, 128), 128)
    if head_pad > head:
        wh = jnp.pad(wh, ((0, 0), (0, head_pad - head)))
        bh = jnp.pad(bh, ((0, 0), (0, head_pad - head)))

    # --- Batch tiling: >=8 sublane rows per tile, pad B to a tile multiple.
    tm = min(tm, _round_up(B, 8))
    b_pad = _round_up(B, tm)
    if b_pad > B:
        x_flat = jnp.pad(x_flat, ((0, b_pad - B), (0, 0)))

    # --- bf16 weights + activations (halves the binding HBM->VMEM weight DMA),
    #     f32 biases, f32 MXU accumulation.
    x_c = x_flat.astype(compute_dtype)
    w1c, w2c, w3c, whc = (w.astype(compute_dtype) for w in (w1, w2, w3, wh))
    b1f, b2f, b3f, bhf = (b.astype(jnp.float32) for b in (b1, b2, b3, bh))

    grid = (b_pad // tm,)

    def row_block(shape):
        return pl.BlockSpec(shape, lambda i: (i, 0))

    def resident(shape):
        # Same block index every grid step -> weights stay resident in VMEM
        # (no re-DMA across batch tiles).
        return pl.BlockSpec(shape, lambda i: (0, 0))

    flops = 2 * b_pad * (d_in * 512 + 512 * 256 + 256 * 128 + 128 * head_pad)
    bytes_accessed = (
        x_c.size * x_c.dtype.itemsize
        + sum(a.size * a.dtype.itemsize
              for a in (w1c, w2c, w3c, whc, b1f, b2f, b3f, bhf))
        + b_pad * head_pad * 4)

    out = pl.pallas_call(
        encoder4layers_kernel,
        out_shape=jax.ShapeDtypeStruct((b_pad, head_pad), jnp.float32),
        grid=grid,
        in_specs=[
            row_block((tm, d_in)),
            resident((d_in, 512)), resident((1, 512)),
            resident((512, 256)), resident((1, 256)),
            resident((256, 128)), resident((1, 128)),
            resident((128, head_pad)), resident((1, head_pad)),
        ],
        out_specs=row_block((tm, head_pad)),
        compiler_params=pltpu.CompilerParams(
            dimension_semantics=("parallel",)),
        cost_estimate=pl.CostEstimate(
            flops=flops, transcendentals=0, bytes_accessed=bytes_accessed),
    )(x_c, w1c, b1f, w2c, b2f, w3c, b3f, whc, bhf)

    mu = out[:B, :latent]
    log_var = out[:B, latent:head]
    return mu, log_var


def init_params(key, input_size, latent_dims):
    """Deterministic init. Weights stored as (in_features, out_features)."""
    dims = [(input_size, 512), (512, 256), (256, 128),
            (128, latent_dims), (128, latent_dims)]
    params = []
    for i, (fan_in, fan_out) in enumerate(dims):
        kw, kb = jax.random.split(jax.random.fold_in(key, i))
        bound = 1.0 / jnp.sqrt(float(fan_in))     # torch Linear default range
        w = jax.random.uniform(kw, (fan_in, fan_out), jnp.float32, -bound, bound)
        b = jax.random.uniform(kb, (1, fan_out), jnp.float32, -bound, bound)
        params.append((w, b))
    return params


def reference_forward(x, params, compute_dtype=jnp.bfloat16):
    """Plain-JAX reference mirroring the kernel's bf16-weight / f32-accum math."""
    (w1, b1), (w2, b2), (w3, b3), (w4, b4), (w5, b5) = params

    def lin(h, w, b):
        return jnp.dot(h.astype(compute_dtype), w.astype(compute_dtype),
                       preferred_element_type=jnp.float32) + b.astype(jnp.float32)

    h = x.reshape(x.shape[0], -1)
    h = jax.nn.relu(lin(h, w1, b1))
    h = jax.nn.relu(lin(h, w2, b2))
    h = jax.nn.relu(lin(h, w3, b3))
    return lin(h, w4, b4), lin(h, w5, b5)


if __name__ == "__main__":
    key = jax.random.PRNGKey(0)
    kx, kp = jax.random.split(key)

    B, C, H, W = 2, 4, 16, 16
    input_size = C * H * W          # 1024
    latent_dims = 32

    x = jax.random.normal(kx, (B, C, H, W), jnp.float32)
    params = init_params(kp, input_size, latent_dims)

    mu, log_var = encoder4layers_forward(x, params)
    mu = jax.block_until_ready(mu)
    log_var = jax.block_until_ready(log_var)

    mu_ref, lv_ref = reference_forward(x, params)
    assert mu.shape == (B, latent_dims) and log_var.shape == (B, latent_dims)
    assert jnp.allclose(mu, mu_ref, atol=1e-2, rtol=1e-2), \
        float(jnp.max(jnp.abs(mu - mu_ref)))
    assert jnp.allclose(log_var, lv_ref, atol=1e-2, rtol=1e-2), \
        float(jnp.max(jnp.abs(log_var - lv_ref)))

    print("KERNEL_OK")
</pallas_src>

<mosaic_0001>
module attributes {stable_mosaic.version = 11 : i64} {
  func.func @encoder4layers_kernel(%arg0: i32, %arg1: memref<8x1024xbf16, #tpu.memory_space<vmem>>, %arg2: memref<1024x512xbf16, #tpu.memory_space<vmem>>, %arg3: memref<1x512xf32, #tpu.memory_space<vmem>>, %arg4: memref<512x256xbf16, #tpu.memory_space<vmem>>, %arg5: memref<1x256xf32, #tpu.memory_space<vmem>>, %arg6: memref<256x128xbf16, #tpu.memory_space<vmem>>, %arg7: memref<1x128xf32, #tpu.memory_space<vmem>>, %arg8: memref<128x128xbf16, #tpu.memory_space<vmem>>, %arg9: memref<1x128xf32, #tpu.memory_space<vmem>>, %arg10: memref<8x128xf32, #tpu.memory_space<vmem>>) attributes {dimension_semantics = [#tpu.dimension_semantics<parallel>], iteration_bounds = array<i64: 1>, scalar_prefetch = 0 : i64, scratch_operands = 0 : i64, tpu.core_type = #tpu.core_type<tc>, window_params = [{transform_indices = @transform_0, window_bounds = array<i64: 8, 1024>}, {pipeline_mode = #tpu.pipeline_mode<synchronous>, transform_indices = @transform_1, window_bounds = array<i64: 1024, 512>}, {pipeline_mode = #tpu.pipeline_mode<synchronous>, transform_indices = @transform_2, window_bounds = array<i64: 1, 512>}, {pipeline_mode = #tpu.pipeline_mode<synchronous>, transform_indices = @transform_3, window_bounds = array<i64: 512, 256>}, {pipeline_mode = #tpu.pipeline_mode<synchronous>, transform_indices = @transform_4, window_bounds = array<i64: 1, 256>}, {pipeline_mode = #tpu.pipeline_mode<synchronous>, transform_indices = @transform_5, window_bounds = array<i64: 256, 128>}, {pipeline_mode = #tpu.pipeline_mode<synchronous>, transform_indices = @transform_6, window_bounds = array<i64: 1, 128>}, {pipeline_mode = #tpu.pipeline_mode<synchronous>, transform_indices = @transform_7, window_bounds = array<i64: 128, 128>}, {pipeline_mode = #tpu.pipeline_mode<synchronous>, transform_indices = @transform_8, window_bounds = array<i64: 1, 128>}, {transform_indices = @transform_9, window_bounds = array<i64: 8, 128>}]} {
    %c0 = arith.constant 0 : index
    %c0_0 = arith.constant 0 : index
    %0 = vector.load %arg1[%c0, %c0_0] : memref<8x1024xbf16, #tpu.memory_space<vmem>>, vector<8x1024xbf16>
    %c0_1 = arith.constant 0 : index
    %c0_2 = arith.constant 0 : index
    %1 = vector.load %arg2[%c0_1, %c0_2] : memref<1024x512xbf16, #tpu.memory_space<vmem>>, vector<1024x512xbf16>
    %cst = arith.constant dense<0.000000e+00> : vector<8x512xf32>
    %2 = tpu.matmul %0, %1, %cst {dimension_numbers = #tpu.dot_dimension_numbers<[1], [0], [0], [1], [0, 0, 1, 1], [], []>} : vector<8x1024xbf16>, vector<1024x512xbf16>, vector<8x512xf32> -> vector<8x512xf32>
    %c0_3 = arith.constant 0 : index
    %c0_4 = arith.constant 0 : index
    %3 = vector.load %arg3[%c0_3, %c0_4] : memref<1x512xf32, #tpu.memory_space<vmem>>, vector<1x512xf32>
    %4 = vector.broadcast %3 : vector<1x512xf32> to vector<8x512xf32>
    %5 = arith.addf %2, %4 : vector<8x512xf32>
    %cst_5 = arith.constant 0.000000e+00 : f32
    %6 = vector.broadcast %cst_5 : f32 to vector<8x512xf32>
    %7 = arith.maximumf %5, %6 : vector<8x512xf32>
    %8 = arith.truncf %7 : vector<8x512xf32> to vector<8x512xbf16>
    %c0_6 = arith.constant 0 : index
    %c0_7 = arith.constant 0 : index
    %9 = vector.load %arg4[%c0_6, %c0_7] : memref<512x256xbf16, #tpu.memory_space<vmem>>, vector<512x256xbf16>
    %cst_8 = arith.constant dense<0.000000e+00> : vector<8x256xf32>
    %10 = tpu.matmul %8, %9, %cst_8 {dimension_numbers = #tpu.dot_dimension_numbers<[1], [0], [0], [1], [0, 0, 1, 1], [], []>} : vector<8x512xbf16>, vector<512x256xbf16>, vector<8x256xf32> -> vector<8x256xf32>
    %c0_9 = arith.constant 0 : index
    %c0_10 = arith.constant 0 : index
    %11 = vector.load %arg5[%c0_9, %c0_10] : memref<1x256xf32, #tpu.memory_space<vmem>>, vector<1x256xf32>
    %12 = vector.broadcast %11 : vector<1x256xf32> to vector<8x256xf32>
    %13 = arith.addf %10, %12 : vector<8x256xf32>
    %cst_11 = arith.constant 0.000000e+00 : f32
    %14 = vector.broadcast %cst_11 : f32 to vector<8x256xf32>
    %15 = arith.maximumf %13, %14 : vector<8x256xf32>
    %16 = arith.truncf %15 : vector<8x256xf32> to vector<8x256xbf16>
    %c0_12 = arith.constant 0 : index
    %c0_13 = arith.constant 0 : index
    %17 = vector.load %arg6[%c0_12, %c0_13] : memref<256x128xbf16, #tpu.memory_space<vmem>>, vector<256x128xbf16>
    %cst_14 = arith.constant dense<0.000000e+00> : vector<8x128xf32>
    %18 = tpu.matmul %16, %17, %cst_14 {dimension_numbers = #tpu.dot_dimension_numbers<[1], [0], [0], [1], [0, 0, 1, 1], [], []>} : vector<8x256xbf16>, vector<256x128xbf16>, vector<8x128xf32> -> vector<8x128xf32>
    %c0_15 = arith.constant 0 : index
    %c0_16 = arith.constant 0 : index
    %19 = vector.load %arg7[%c0_15, %c0_16] : memref<1x128xf32, #tpu.memory_space<vmem>>, vector<1x128xf32>
    %20 = vector.broadcast %19 : vector<1x128xf32> to vector<8x128xf32>
    %21 = arith.addf %18, %20 : vector<8x128xf32>
    %cst_17 = arith.constant 0.000000e+00 : f32
    %22 = vector.broadcast %cst_17 : f32 to vector<8x128xf32>
    %23 = arith.maximumf %21, %22 : vector<8x128xf32>
    %24 = arith.truncf %23 : vector<8x128xf32> to vector<8x128xbf16>
    %c0_18 = arith.constant 0 : index
    %c0_19 = arith.constant 0 : index
    %25 = vector.load %arg8[%c0_18, %c0_19] : memref<128x128xbf16, #tpu.memory_space<vmem>>, vector<128x128xbf16>
    %cst_20 = arith.constant dense<0.000000e+00> : vector<8x128xf32>
    %26 = tpu.matmul %24, %25, %cst_20 {dimension_numbers = #tpu.dot_dimension_numbers<[1], [0], [0], [1], [0, 0, 1, 1], [], []>} : vector<8x128xbf16>, vector<128x128xbf16>, vector<8x128xf32> -> vector<8x128xf32>
    %c0_21 = arith.constant 0 : index
    %c0_22 = arith.constant 0 : index
    %27 = vector.load %arg9[%c0_21, %c0_22] : memref<1x128xf32, #tpu.memory_space<vmem>>, vector<1x128xf32>
    %28 = vector.broadcast %27 : vector<1x128xf32> to vector<8x128xf32>
    %29 = arith.addf %26, %28 : vector<8x128xf32>
    %c0_23 = arith.constant 0 : index
    %c0_24 = arith.constant 0 : index
    %30 = vector.load %arg10[%c0_23, %c0_24] : memref<8x128xf32, #tpu.memory_space<vmem>>, vector<8x128xf32>
    tpu.vector_store %arg10[%c0_23, %c0_24], %29 {strides = array<i32>} : memref<8x128xf32, #tpu.memory_space<vmem>>, vector<8x128xf32>,
    return
  }
  func.func @transform_0(%arg0: i32) -> (i32, i32) {
    %c0_i32 = arith.constant 0 : i32
    %c0_i32_0 = arith.constant 0 : i32
    return %arg0, %c0_i32 : i32, i32
  }
  func.func @transform_1(%arg0: i32) -> (i32, i32) {
    %c0_i32 = arith.constant 0 : i32
    %c0_i32_0 = arith.constant 0 : i32
    %c0_i32_1 = arith.constant 0 : i32
    return %c0_i32, %c0_i32_0 : i32, i32
  }
  func.func @transform_2(%arg0: i32) -> (i32, i32) {
    %c0_i32 = arith.constant 0 : i32
    %c0_i32_0 = arith.constant 0 : i32
    %c0_i32_1 = arith.constant 0 : i32
    return %c0_i32, %c0_i32_0 : i32, i32
  }
  func.func @transform_3(%arg0: i32) -> (i32, i32) {
    %c0_i32 = arith.constant 0 : i32
    %c0_i32_0 = arith.constant 0 : i32
    %c0_i32_1 = arith.constant 0 : i32
    return %c0_i32, %c0_i32_0 : i32, i32
  }
  func.func @transform_4(%arg0: i32) -> (i32, i32) {
    %c0_i32 = arith.constant 0 : i32
    %c0_i32_0 = arith.constant 0 : i32
    %c0_i32_1 = arith.constant 0 : i32
    return %c0_i32, %c0_i32_0 : i32, i32
  }
  func.func @transform_5(%arg0: i32) -> (i32, i32) {
    %c0_i32 = arith.constant 0 : i32
    %c0_i32_0 = arith.constant 0 : i32
    %c0_i32_1 = arith.constant 0 : i32
    return %c0_i32, %c0_i32_0 : i32, i32
  }
  func.func @transform_6(%arg0: i32) -> (i32, i32) {
    %c0_i32 = arith.constant 0 : i32
    %c0_i32_0 = arith.constant 0 : i32
    %c0_i32_1 = arith.constant 0 : i32
    return %c0_i32, %c0_i32_0 : i32, i32
  }
  func.func @transform_7(%arg0: i32) -> (i32, i32) {
    %c0_i32 = arith.constant 0 : i32
    %c0_i32_0 = arith.constant 0 : i32
    %c0_i32_1 = arith.constant 0 : i32
    return %c0_i32, %c0_i32_0 : i32, i32
  }
  func.func @transform_8(%arg0: i32) -> (i32, i32) {
    %c0_i32 = arith.constant 0 : i32
    %c0_i32_0 = arith.constant 0 : i32
    %c0_i32_1 = arith.constant 0 : i32
    return %c0_i32, %c0_i32_0 : i32, i32
  }
  func.func @transform_9(%arg0: i32) -> (i32, i32) {
    %c0_i32 = arith.constant 0 : i32
    %c0_i32_0 = arith.constant 0 : i32
    return %arg0, %c0_i32 : i32, i32
  }
}

</mosaic_0001>

<bundles_post_ra>
// kernel: tpu_custom_call.1
= control target key start
LH: loop header
LB: loop body
LE: loop exit
PB: predicated region body
PF: predicated region fallthrough
CT: control target
= control target key end

     0   :  { %14 = vsyncpa [#allocation3], 0  ;;  %s4121_s0 = inlined_call_operand.hbm [shape: bf16[8,1024], index: 0, kind: input, shape index: {}]   ;;  %s4122_s1 = inlined_call_operand.hbm [shape: bf16[1024,512], index: 1, kind: input, shape index: {}]   ;;  %s4123_s2 = inlined_call_operand.vmem [shape: f32[1,512], index: 2, kind: input, shape index: {}]   ;;  %s4124_s3 = inlined_call_operand.hbm [shape: bf16[512,256], index: 3, kind: input, shape index: {}]   ;;  %s4125_s4 = inlined_call_operand.vmem [shape: f32[1,256], index: 4, kind: input, shape index: {}]   ;;  %s4126_s5 = inlined_call_operand.hbm [shape: bf16[256,128], index: 5, kind: input, shape index: {}]   ;;  %s4127_s6 = inlined_call_operand.vmem [shape: f32[1,128], index: 6, kind: input, shape index: {}]   ;;  %s4128_s7 = inlined_call_operand.hbm [shape: bf16[128,128], index: 7, kind: input, shape index: {}]   ;;  %s4129_s8 = inlined_call_operand.vmem [shape: f32[1,128], index: 8, kind: input, shape index: {}]   ;;  %s4130_s9 = inlined_call_operand.hbm [shape: f32[8,128], index: 9, kind: output, shape index: {}]  }
   0x1   :  { %15 = vsyncpa [#allocation6], 0 }
   0x2   :  { %16 = vsyncpa [#allocation9], 0 }
   0x3   :  { %17 = vsyncpa [#allocation4], 0  ;;  %s3919_s30 = smov [#allocation5]   ;;  %s3779_s13 = scalar_lea.hbm %s4122_s1, 32768 }
   0x4   :  { %s33_s10 = sshll.u32 %s3919_s30, 4  ;;  %p3780_p0 = scmp.ne.s32.totalorder %s4122_s1, %s3779_s13  ;;  %s34_s10 = int_to_ptr.vmem [resolvable:$true] %s33_s10 }
   0x5   :  { %p3783_p1 = scmp.lt.u32.totalorder %s3779_s13, %s4122_s1 }
   0x7   :  { %p3785_p2 = pnand %p3783_p1, %p3780_p0 }
   0x9   :  { %3788 = shalt.err (!%p3785_p2)
}
   0xa   :  { %s3789_s18 = scalar_lea.vmem %s34_s10, 32768  ;;  %p3794_p4 = scmp.lt.s32.totalorder %s34_s10, %s34_s10 }
   0xb   :  { %p3790_p3 = scmp.ne.s32.totalorder %s34_s10, %s3789_s18  ;;  %p3795_p5 = scmp.lt.s32.totalorder %s3789_s18, %s3789_s18 }
   0xd   :  { %p3796_p6 = por %p3795_p5, %p3794_p4 }
   0xf   :  { %p3797_p7 = pnand %p3796_p6, %p3790_p3 }
  0x11   :  { %3800 = shalt.err (!%p3797_p7)
}
  0x12   :  { %s3920_s19 = smov 256   ;;  %s3921_s20 = smov 16  }
  0x13   :  { %39 = dma.hbm_to_vmem [thread:$0]  %s4122_s1, 32768, %s34_s10, [#allocation6], %s3920_s19, %s3920_s19, %s3921_s20  }
  0x14   :  { %s3922_s23 = smov [#allocation8]   ;;  %s3801_s27 = scalar_lea.hbm %s4126_s5, 2048 }
  0x15   :  { %s61_s24 = sshll.u32 %s3922_s23, 4  ;;  %p3802_p8 = scmp.ne.s32.totalorder %s4126_s5, %s3801_s27  ;;  %s62_s24 = int_to_ptr.vmem [resolvable:$true] %s61_s24 }
  0x16   :  { %p3805_p9 = scmp.lt.u32.totalorder %s3801_s27, %s4126_s5 }
  0x18   :  { %p3807_p10 = pnand %p3805_p9, %p3802_p8 }
  0x1a   :  { %3810 = shalt.err (!%p3807_p10)
}
  0x1b   :  { %s3811_s12 = scalar_lea.vmem %s62_s24, 2048  ;;  %p3816_p12 = scmp.lt.s32.totalorder %s62_s24, %s62_s24 }
  0x1c   :  { %p3812_p11 = scmp.ne.s32.totalorder %s62_s24, %s3811_s12  ;;  %p3817_p13 = scmp.lt.s32.totalorder %s3811_s12, %s3811_s12 }
  0x1e   :  { %p3818_p0 = por %p3817_p13, %p3816_p12 }
  0x20   :  { %p3819_p1 = pnand %p3818_p0, %p3812_p11 }
  0x22   :  { %3822 = shalt.err (!%p3819_p1)
}
  0x23   :  { %s3923_s1 = smov 64   ;;  %s3924_s10 = smov 4  }
  0x24   :  { %67 = dma.hbm_to_vmem [thread:$0]  %s4126_s5, 2048, %s62_s24, [#allocation9], %s3923_s1, %s3923_s1, %s3924_s10  }
  0x25   :  { %s3925_s15 = smov [#allocation2]   ;;  %s3926_s17 = smov [#allocation7]  }
  0x26   :  { %s24_s16 = sshll.u32 %s3925_s15, 4  ;;  %s47_s18 = sshll.u32 %s3926_s17, 4  ;;  %s25_s16 = int_to_ptr.vmem [resolvable:$true] %s24_s16  ;;  %s4010_s18 = int_to_ptr.vmem [resolvable:$true] %s47_s18 }
  0x27   :  { %s3823_s21 = scalar_lea.hbm %s4121_s0, 512 }
  0x28   :  { %p3824_p2 = scmp.ne.s32.totalorder %s4121_s0, %s3823_s21  ;;  %p3827_p3 = scmp.lt.u32.totalorder %s3823_s21, %s4121_s0 }
  0x2a   :  { %p3829_p4 = pnand %p3827_p3, %p3824_p2 }
  0x2c   :  { %3832 = shalt.err (!%p3829_p4)
}
  0x2d   :  { %s3833_s5 = scalar_lea.vmem %s25_s16, 512  ;;  %p3838_p6 = scmp.lt.s32.totalorder %s25_s16, %s25_s16 }
  0x2e   :  { %p3834_p5 = scmp.ne.s32.totalorder %s25_s16, %s3833_s5  ;;  %p3839_p7 = scmp.lt.s32.totalorder %s3833_s5, %s3833_s5 }
  0x30   :  { %p3840_p8 = por %p3839_p7, %p3838_p6 }
  0x32   :  { %p3841_p9 = pnand %p3840_p8, %p3834_p5 }
  0x34   :  { %3844 = shalt.err (!%p3841_p9)
}
  0x35   :  { %27 = dma.hbm_to_vmem [thread:$0]  %s4121_s0, 512, %s25_s16, [#allocation3]  }
  0x36   :  { %s3845_s30 = scalar_lea.hbm %s4124_s3, 8192 }
  0x37   :  { %p3846_p10 = scmp.ne.s32.totalorder %s4124_s3, %s3845_s30  ;;  %p3849_p11 = scmp.lt.u32.totalorder %s3845_s30, %s4124_s3 }
  0x39   :  { %p3851_p12 = pnand %p3849_p11, %p3846_p10 }
  0x3b   :  { %3854 = shalt.err (!%p3851_p12)
}
  0x3c   :  { %s3855_s15 = scalar_lea.vmem %s4010_s18, 8192  ;;  %p3860_p0 = scmp.lt.s32.totalorder %s4010_s18, %s4010_s18 }
  0x3d   :  { %p3856_p13 = scmp.ne.s32.totalorder %s4010_s18, %s3855_s15  ;;  %p3861_p1 = scmp.lt.s32.totalorder %s3855_s15, %s3855_s15 }
  0x3f   :  { %p3862_p2 = por %p3861_p1, %p3860_p0 }
  0x41   :  { %p3863_p3 = pnand %p3862_p2, %p3856_p13 }
  0x43   :  { %3866 = shalt.err (!%p3863_p3)
}
  0x44   :  { %s3927_s0 = smov 128   ;;  %s3928_s16 = smov 8  }
  0x45   :  { %53 = dma.hbm_to_vmem [thread:$0]  %s4124_s3, 8192, %s4010_s18, [#allocation6], %s3927_s0, %s3927_s0, %s3928_s16  }
  0x46   :  { %s3929_s20 = smov [#allocation10]   ;;  %s3867_s25 = scalar_lea.hbm %s4128_s7, 1024 }
  0x47   :  { %s75_s21 = sshll.u32 %s3929_s20, 4  ;;  %p3868_p4 = scmp.ne.s32.totalorder %s4128_s7, %s3867_s25  ;;  %s76_s21 = int_to_ptr.vmem [resolvable:$true] %s75_s21 }
  0x48   :  { %p3871_p5 = scmp.lt.u32.totalorder %s3867_s25, %s4128_s7 }
  0x4a   :  { %p3873_p6 = pnand %p3871_p5, %p3868_p4 }
  0x4c   :  { %3876 = shalt.err (!%p3873_p6)
}
  0x4d   :  { %s3877_s28 = scalar_lea.vmem %s76_s21, 1024  ;;  %p3882_p8 = scmp.lt.s32.totalorder %s76_s21, %s76_s21 }
  0x4e   :  { %p3878_p7 = scmp.ne.s32.totalorder %s76_s21, %s3877_s28  ;;  %p3883_p9 = scmp.lt.s32.totalorder %s3877_s28, %s3877_s28 }
  0x50   :  { %p3884_p10 = por %p3883_p9, %p3882_p8 }
  0x52   :  { %p3885_p11 = pnand %p3884_p10, %p3878_p7 }
  0x54   :  { %3888 = shalt.err (!%p3885_p11)
}
  0x55   :  { %81 = dma.hbm_to_vmem [thread:$0]  %s4128_s7, 1024, %s76_s21, [#allocation9], %s3923_s1, %s3923_s1, %s3924_s10  }
  0x56   :  { %3911 = dma.done.wait [#allocation3], 512  }
  0x57   :  { %3912 = vsyncadd [#allocation3], 4294966784 }
  0x58   :  { %3913 = dma.done.wait [#allocation6], 40960  }
  0x59   :  { %3914 = vsyncadd [#allocation6], 4294926336 }
  0x5a   :  { %3915 = dma.done.wait [#allocation9], 3072  }
  0x5b   :  { %3916 = vsyncadd [#allocation9], 4294964224  ;;  %v3267_v0 = vld [vmem:[#allocation5 + $0x4] ss:$16 sps:$4 sm:$0xff]   ;;  %v3269_v1 = vld [vmem:[#allocation5 + $0xc] ss:$16 sps:$4 sm:$0xff]  }
  0x5c   :  { %1690 = vmatprep.subr.bf16.mxu0 %v3267_v0  ;;  %v3271_v2 = vld [vmem:[#allocation5] ss:$16 sps:$4 sm:$0xff]   ;;  %v3272_v3 = vld [vmem:[#allocation5 + $0x8] ss:$16 sps:$4 sm:$0xff]   ;;  %1854 = vmatprep.subr.bf16.mxu1 %v3269_v1  ;;  %v3273_v4 = vld [vmem:[#allocation5 + $0x24] ss:$16 sps:$4 sm:$0xff]  }
  0x5d   :  { %1691 = vmatpush1.bf16.msra.mxu0 %v3271_v2  ;;  %1855 = vmatpush1.bf16.msra.mxu1 %v3272_v3  ;;  %v3275_v5 = vld [vmem:[#allocation5 + $0x2c] ss:$16 sps:$4 sm:$0xff]   ;;  %v3277_v6 = vld [vmem:[#allocation5 + $0x20] ss:$16 sps:$4 sm:$0xff]   ;;  %v3278_v7 = vld [vmem:[#allocation5 + $0x28] ss:$16 sps:$4 sm:$0xff]  }
  0x5e   :  { %1692 = vmatprep.subr.bf16.mxu0 %v3273_v4  ;;  %1856 = vmatprep.subr.bf16.mxu1 %v3275_v5  ;;  %v3279_v8 = vld [vmem:[#allocation5 + $0x44] ss:$16 sps:$4 sm:$0xff]   ;;  %v3281_v9 = vld [vmem:[#allocation5 + $0x4c] ss:$16 sps:$4 sm:$0xff]   ;;  %v3283_v10 = vld [vmem:[#allocation5 + $0x40] ss:$16 sps:$4 sm:$0xff]  }
  0x5f   :  { %v3284_v11 = vld [vmem:[#allocation5 + $0x48] ss:$16 sps:$4 sm:$0xff]   ;;  %v3285_v12 = vld [vmem:[#allocation5 + $0x64] ss:$16 sps:$4 sm:$0xff]   ;;  %v3287_v13 = vld [vmem:[#allocation5 + $0x6c] ss:$16 sps:$4 sm:$0xff]  }
  0x60   :  { %v3289_v14 = vld [vmem:[#allocation5 + $0x60] ss:$16 sps:$4 sm:$0xff]   ;;  %v3290_v15 = vld [vmem:[#allocation5 + $0x68] ss:$16 sps:$4 sm:$0xff]   ;;  %v3291_v16 = vld [vmem:[#allocation5 + $0x84] ss:$16 sps:$4 sm:$0xff]  }
  0x61   :  { %1693 = vmatpush1.bf16.msra.mxu0 %v3277_v6  ;;  %1857 = vmatpush1.bf16.msra.mxu1 %v3278_v7  ;;  %v3293_v17 = vld [vmem:[#allocation5 + $0x8c] ss:$16 sps:$4 sm:$0xff]   ;;  %v3295_v18 = vld [vmem:[#allocation5 + $0x80] ss:$16 sps:$4 sm:$0xff]   ;;  %v3296_v19 = vld [vmem:[#allocation5 + $0x88] ss:$16 sps:$4 sm:$0xff]  }
  0x62   :  { %1694 = vmatprep.subr.bf16.mxu0 %v3279_v8  ;;  %1858 = vmatprep.subr.bf16.mxu1 %v3281_v9  ;;  %v3297_v20 = vld [vmem:[#allocation5 + $0xa4] ss:$16 sps:$4 sm:$0xff]   ;;  %v3299_v21 = vld [vmem:[#allocation5 + $0xac] ss:$16 sps:$4 sm:$0xff]   ;;  %v3301_v22 = vld [vmem:[#allocation5 + $0xa0] ss:$16 sps:$4 sm:$0xff]  }
  0x63   :  { %v3302_v23 = vld [vmem:[#allocation5 + $0xa8] ss:$16 sps:$4 sm:$0xff]   ;;  %v3303_v24 = vld [vmem:[#allocation5 + $0xc4] ss:$16 sps:$4 sm:$0xff]   ;;  %v3305_v25 = vld [vmem:[#allocation5 + $0xcc] ss:$16 sps:$4 sm:$0xff]  }
  0x64   :  { %v3307_v26 = vld [vmem:[#allocation5 + $0xc0] ss:$16 sps:$4 sm:$0xff]   ;;  %v3308_v27 = vld [vmem:[#allocation5 + $0xc8] ss:$16 sps:$4 sm:$0xff]   ;;  %v3309_v28 = vld [vmem:[#allocation5 + $0xe4] ss:$16 sps:$4 sm:$0xff]  }
  0x65   :  { %1695 = vmatpush1.bf16.msra.mxu0 %v3283_v10  ;;  %1859 = vmatpush1.bf16.msra.mxu1 %v3284_v11  ;;  %v3311_v29 = vld [vmem:[#allocation5 + $0xec] ss:$16 sps:$4 sm:$0xff]   ;;  %v3313_v30 = vld [vmem:[#allocation5 + $0xe0] ss:$16 sps:$4 sm:$0xff]   ;;  %v3314_v31 = vld [vmem:[#allocation5 + $0xe8] ss:$16 sps:$4 sm:$0xff]  }
  0x66   :  { %1696 = vmatprep.subr.bf16.mxu0 %v3285_v12  ;;  %1860 = vmatprep.subr.bf16.mxu1 %v3287_v13  ;;  %v3315_v32 = vld [vmem:[#allocation5 + $0x104] ss:$16 sps:$4 sm:$0xff]   ;;  %v3317_v33 = vld [vmem:[#allocation5 + $0x10c] ss:$16 sps:$4 sm:$0xff]   ;;  %v3319_v34 = vld [vmem:[#allocation5 + $0x100] ss:$16 sps:$4 sm:$0xff]  }
  0x67   :  { %v3320_v35 = vld [vmem:[#allocation5 + $0x108] ss:$16 sps:$4 sm:$0xff]   ;;  %v3321_v36 = vld [vmem:[#allocation5 + $0x124] ss:$16 sps:$4 sm:$0xff]   ;;  %v3323_v37 = vld [vmem:[#allocation5 + $0x12c] ss:$16 sps:$4 sm:$0xff]  }
  0x68   :  { %v3325_v38 = vld [vmem:[#allocation5 + $0x120] ss:$16 sps:$4 sm:$0xff]   ;;  %v3326_v39 = vld [vmem:[#allocation5 + $0x128] ss:$16 sps:$4 sm:$0xff]   ;;  %v3327_v40 = vld [vmem:[#allocation5 + $0x144] ss:$16 sps:$4 sm:$0xff]  }
  0x69   :  { %1697 = vmatpush1.bf16.msra.mxu0 %v3289_v14  ;;  %1861 = vmatpush1.bf16.msra.mxu1 %v3290_v15  ;;  %v3329_v41 = vld [vmem:[#allocation5 + $0x14c] ss:$16 sps:$4 sm:$0xff]   ;;  %v3331_v42 = vld [vmem:[#allocation5 + $0x140] ss:$16 sps:$4 sm:$0xff]   ;;  %v3332_v43 = vld [vmem:[#allocation5 + $0x148] ss:$16 sps:$4 sm:$0xff]  }
  0x6a   :  { %1698 = vmatprep.subr.bf16.mxu0 %v3291_v16  ;;  %1862 = vmatprep.subr.bf16.mxu1 %v3293_v17  ;;  %v3333_v44 = vld [vmem:[#allocation5 + $0x164] ss:$16 sps:$4 sm:$0xff]   ;;  %v3335_v45 = vld [vmem:[#allocation5 + $0x16c] ss:$16 sps:$4 sm:$0xff]   ;;  %v3337_v47 = vld [vmem:[#allocation5 + $0x160] ss:$16 sps:$4 sm:$0xff]  }
  0x6b   :  { %v100_v46 = vld [vmem:[#allocation2] sm:$0xff]  ;;  %v3338_v49 = vld [vmem:[#allocation5 + $0x168] ss:$16 sps:$4 sm:$0xff]   ;;  %v3341_v51 = vld [vmem:[#allocation5 + $0x18c] ss:$16 sps:$4 sm:$0xff]   ;;  %vm3931_vm0 = vmmov 0  }
  0x6c   :  { %v2815_v48 = vcombine.high %v100_v46, %v100_v46  ;;  %v3339_v50 = vld [vmem:[#allocation5 + $0x184] ss:$16 sps:$4 sm:$0xff]   ;;  %v3343_v52 = vld [vmem:[#allocation5 + $0x180] ss:$16 sps:$4 sm:$0xff]   ;;  %v3344_v53 = vld [vmem:[#allocation5 + $0x188] ss:$16 sps:$4 sm:$0xff]   ;;  %v2814_v4 = vcombine.low %v100_v46, %v100_v46 }
  0x6d   :  { %1699 = vmatpush1.bf16.msra.mxu0 %v3295_v18  ;;  %1863 = vmatpush1.bf16.msra.mxu1 %v3296_v19  ;;  %v3345_v54 = vld [vmem:[#allocation5 + $0x1a4] ss:$16 sps:$4 sm:$0xff]   ;;  %v3347_v55 = vld [vmem:[#allocation5 + $0x1ac] ss:$16 sps:$4 sm:$0xff]   ;;  %v3349_v56 = vld [vmem:[#allocation5 + $0x1a0] ss:$16 sps:$4 sm:$0xff]  }
  0x6e   :  { %1700 = vmatprep.subr.bf16.mxu0 %v3297_v20  ;;  %1864 = vmatprep.subr.bf16.mxu1 %v3299_v21  ;;  %v3350_v57 = vld [vmem:[#allocation5 + $0x1a8] ss:$16 sps:$4 sm:$0xff]   ;;  %v3351_v58 = vld [vmem:[#allocation5 + $0x1c4] ss:$16 sps:$4 sm:$0xff]   ;;  %v3353_v59 = vld [vmem:[#allocation5 + $0x1cc] ss:$16 sps:$4 sm:$0xff]  }
  0x6f   :  { %1722 = vmatprep.mubr.bf16.mxu0 %v2815_v48  ;;  %1886 = vmatprep.mubr.bf16.mxu1 %v2815_v48  ;;  %v3355_v60 = vld [vmem:[#allocation5 + $0x1c0] ss:$16 sps:$4 sm:$0xff]   ;;  %v3356_v61 = vld [vmem:[#allocation5 + $0x1c8] ss:$16 sps:$4 sm:$0xff]   ;;  %v3357_v62 = vld [vmem:[#allocation5 + $0x1e4] ss:$16 sps:$4 sm:$0xff]  }
  0x70   :  { %v3359_v63 = vld [vmem:[#allocation5 + $0x1ec] ss:$16 sps:$4 sm:$0xff]   ;;  %v3361_v0 = vld [vmem:[#allocation5 + $0x1e0] ss:$16 sps:$4 sm:$0xff]   ;;  %v3362_v1 = vld [vmem:[#allocation5 + $0x1e8] ss:$16 sps:$4 sm:$0xff]  }
  0x71   :  { %1701 = vmatpush1.bf16.msra.mxu0 %v3301_v22  ;;  %1865 = vmatpush1.bf16.msra.mxu1 %v3302_v23  ;;  %v3367_v2 = vld [vmem:[#allocation5 + $0x204] ss:$16 sps:$4 sm:$0xff]   ;;  %v3370_v3 = vld [vmem:[#allocation5 + $0x20c] ss:$16 sps:$4 sm:$0xff]   ;;  %v3365_v5 = vld [vmem:[#allocation5 + $0x200] ss:$16 sps:$4 sm:$0xff]  }
  0x72   :  { %1702 = vmatprep.subr.bf16.mxu0 %v3303_v24  ;;  %1866 = vmatprep.subr.bf16.mxu1 %v3305_v25  ;;  %v3368_v6 = vld [vmem:[#allocation5 + $0x208] ss:$16 sps:$4 sm:$0xff]   ;;  %v3373_v7 = vld [vmem:[#allocation5 + $0x224] ss:$16 sps:$4 sm:$0xff]   ;;  %v3376_v8 = vld [vmem:[#allocation5 + $0x22c] ss:$16 sps:$4 sm:$0xff]  }
  0x73   :  { %v3371_v9 = vld [vmem:[#allocation5 + $0x220] ss:$16 sps:$4 sm:$0xff]   ;;  %v3374_v10 = vld [vmem:[#allocation5 + $0x228] ss:$16 sps:$4 sm:$0xff]   ;;  %v3379_v11 = vld [vmem:[#allocation5 + $0x244] ss:$16 sps:$4 sm:$0xff]  }
  0x74   :  { %v3382_v12 = vld [vmem:[#allocation5 + $0x24c] ss:$16 sps:$4 sm:$0xff]   ;;  %v3377_v13 = vld [vmem:[#allocation5 + $0x240] ss:$16 sps:$4 sm:$0xff]   ;;  %v3380_v14 = vld [vmem:[#allocation5 + $0x248] ss:$16 sps:$4 sm:$0xff]  }
  0x75   :  { %1703 = vmatpush1.bf16.msra.mxu0 %v3307_v26  ;;  %1867 = vmatpush1.bf16.msra.mxu1 %v3308_v27  ;;  %v3385_v15 = vld [vmem:[#allocation5 + $0x264] ss:$16 sps:$4 sm:$0xff]   ;;  %v3388_v16 = vld [vmem:[#allocation5 + $0x26c] ss:$16 sps:$4 sm:$0xff]   ;;  %v3383_v17 = vld [vmem:[#allocation5 + $0x260] ss:$16 sps:$4 sm:$0xff]  }
  0x76   :  { %1704 = vmatprep.subr.bf16.mxu0 %v3309_v28  ;;  %1868 = vmatprep.subr.bf16.mxu1 %v3311_v29  ;;  %v3386_v18 = vld [vmem:[#allocation5 + $0x268] ss:$16 sps:$4 sm:$0xff]   ;;  %v3391_v19 = vld [vmem:[#allocation5 + $0x284] ss:$16 sps:$4 sm:$0xff]   ;;  %v3394_v20 = vld [vmem:[#allocation5 + $0x28c] ss:$16 sps:$4 sm:$0xff]  }
  0x77   :  { %v3389_v21 = vld [vmem:[#allocation5 + $0x280] ss:$16 sps:$4 sm:$0xff]   ;;  %v3392_v22 = vld [vmem:[#allocation5 + $0x288] ss:$16 sps:$4 sm:$0xff]   ;;  %v3397_v23 = vld [vmem:[#allocation5 + $0x2a4] ss:$16 sps:$4 sm:$0xff]  }
  0x78   :  { %v3400_v24 = vld [vmem:[#allocation5 + $0x2ac] ss:$16 sps:$4 sm:$0xff]   ;;  %v3395_v25 = vld [vmem:[#allocation5 + $0x2a0] ss:$16 sps:$4 sm:$0xff]   ;;  %v3398_v26 = vld [vmem:[#allocation5 + $0x2a8] ss:$16 sps:$4 sm:$0xff]  }
  0x79   :  { %1705 = vmatpush1.bf16.msra.mxu0 %v3313_v30  ;;  %1869 = vmatpush1.bf16.msra.mxu1 %v3314_v31  ;;  %v3403_v27 = vld [vmem:[#allocation5 + $0x2c4] ss:$16 sps:$4 sm:$0xff]   ;;  %v3406_v28 = vld [vmem:[#allocation5 + $0x2cc] ss:$16 sps:$4 sm:$0xff]   ;;  %v3401_v31 = vld [vmem:[#allocation5 + $0x2c0] ss:$16 sps:$4 sm:$0xff]  }
  0x7a   :  { %1706 = vmatprep.subr.bf16.mxu0 %v3315_v32  ;;  %1870 = vmatprep.subr.bf16.mxu1 %v3317_v33  ;;  %v4056_v29 = vld [vmem:[#allocation2 + $0x8] sm:$0xff]  ;;  %v3409_v33 = vld [vmem:[#allocation5 + $0x2e4] ss:$16 sps:$4 sm:$0xff]   ;;  %s3932_s12 = smov [#allocation11]  }
  0x7b   :  { %v2817_v30 = vcombine.high %v4056_v29, %v4056_v29  ;;  %v3404_v32 = vld [vmem:[#allocation5 + $0x2c8] ss:$16 sps:$4 sm:$0xff]   ;;  %v3430_v46 = vld [vmem:[#allocation5 + $0x34c] ss:$16 sps:$4 sm:$0xff]   ;;  %s2803_s13 = sshll.u32 %s3932_s12, 4  ;;  %s2804_s13 = int_to_ptr.vmem [resolvable:$true] %s2803_s13 }
  0x7c   :  { %v3428_v48 = vld [vmem:[#allocation5 + $0x348] ss:$16 sps:$4 sm:$0xff]   ;;  %p3894_p13 = scmp.lt.s32.totalorder %s2804_s13, %s2804_s13 }
  0x7d   :  { %1707 = vmatpush1.bf16.msra.mxu0 %v3319_v34  ;;  %1871 = vmatpush1.bf16.msra.mxu1 %v3320_v35  ;;  %v3412_v34 = vld [vmem:[#allocation5 + $0x2ec] ss:$16 sps:$4 sm:$0xff]   ;;  %v3407_v35 = vld [vmem:[#allocation5 + $0x2e0] ss:$16 sps:$4 sm:$0xff]  }
  0x7e   :  { %1708 = vmatprep.subr.bf16.mxu0 %v3321_v36  ;;  %1872 = vmatprep.subr.bf16.mxu1 %v3323_v37  ;;  %v3410_v36 = vld [vmem:[#allocation5 + $0x2e8] ss:$16 sps:$4 sm:$0xff]   ;;  %v3415_v37 = vld [vmem:[#allocation5 + $0x304] ss:$16 sps:$4 sm:$0xff]  }
  0x81   :  { %1709 = vmatpush1.bf16.msra.mxu0 %v3325_v38  ;;  %1873 = vmatpush1.bf16.msra.mxu1 %v3326_v39  ;;  %v3418_v38 = vld [vmem:[#allocation5 + $0x30c] ss:$16 sps:$4 sm:$0xff]   ;;  %v3413_v39 = vld [vmem:[#allocation5 + $0x300] ss:$16 sps:$4 sm:$0xff]  }
  0x82   :  { %1710 = vmatprep.subr.bf16.mxu0 %v3327_v40  ;;  %1874 = vmatprep.subr.bf16.mxu1 %v3329_v41  ;;  %v3416_v40 = vld [vmem:[#allocation5 + $0x308] ss:$16 sps:$4 sm:$0xff]   ;;  %v3421_v41 = vld [vmem:[#allocation5 + $0x324] ss:$16 sps:$4 sm:$0xff]  }
  0x85   :  { %1711 = vmatpush1.bf16.msra.mxu0 %v3331_v42  ;;  %1875 = vmatpush1.bf16.msra.mxu1 %v3332_v43  ;;  %v3424_v42 = vld [vmem:[#allocation5 + $0x32c] ss:$16 sps:$4 sm:$0xff]   ;;  %v3419_v43 = vld [vmem:[#allocation5 + $0x320] ss:$16 sps:$4 sm:$0xff]  }
  0x86   :  { %1712 = vmatprep.subr.bf16.mxu0 %v3333_v44  ;;  %1876 = vmatprep.subr.bf16.mxu1 %v3335_v45  ;;  %v3422_v44 = vld [vmem:[#allocation5 + $0x328] ss:$16 sps:$4 sm:$0xff]   ;;  %v3427_v45 = vld [vmem:[#allocation5 + $0x344] ss:$16 sps:$4 sm:$0xff]  }
  0x89   :  { %1713 = vmatpush1.bf16.msra.mxu0 %v3337_v47  ;;  %1877 = vmatpush1.bf16.msra.mxu1 %v3338_v49  ;;  %v3425_v47 = vld [vmem:[#allocation5 + $0x340] ss:$16 sps:$4 sm:$0xff]   ;;  %v3433_v49 = vld [vmem:[#allocation5 + $0x364] ss:$16 sps:$4 sm:$0xff]  }
  0x8a   :  { %1714 = vmatprep.subr.bf16.mxu0 %v3339_v50  ;;  %1878 = vmatprep.subr.bf16.mxu1 %v3341_v51  ;;  %v3436_v50 = vld [vmem:[#allocation5 + $0x36c] ss:$16 sps:$4 sm:$0xff]   ;;  %v3431_v51 = vld [vmem:[#allocation5 + $0x360] ss:$16 sps:$4 sm:$0xff]  }
  0x8d   :  { %1715 = vmatpush1.bf16.msra.mxu0 %v3343_v52  ;;  %1879 = vmatpush1.bf16.msra.mxu1 %v3344_v53  ;;  %v3434_v52 = vld [vmem:[#allocation5 + $0x368] ss:$16 sps:$4 sm:$0xff]   ;;  %v3439_v53 = vld [vmem:[#allocation5 + $0x384] ss:$16 sps:$4 sm:$0xff]  }
  0x8e   :  { %1716 = vmatprep.subr.bf16.mxu0 %v3345_v54  ;;  %1880 = vmatprep.subr.bf16.mxu1 %v3347_v55  ;;  %v3442_v54 = vld [vmem:[#allocation5 + $0x38c] ss:$16 sps:$4 sm:$0xff]   ;;  %v3437_v55 = vld [vmem:[#allocation5 + $0x380] ss:$16 sps:$4 sm:$0xff]  }
  0x91   :  { %1717 = vmatpush1.bf16.msra.mxu0 %v3349_v56  ;;  %1881 = vmatpush1.bf16.msra.mxu1 %v3350_v57  ;;  %v3440_v56 = vld [vmem:[#allocation5 + $0x388] ss:$16 sps:$4 sm:$0xff]   ;;  %v3445_v57 = vld [vmem:[#allocation5 + $0x3a4] ss:$16 sps:$4 sm:$0xff]  }
  0x92   :  { %1718 = vmatprep.subr.bf16.mxu0 %v3351_v58  ;;  %1882 = vmatprep.subr.bf16.mxu1 %v3353_v59  ;;  %v3448_v58 = vld [vmem:[#allocation5 + $0x3ac] ss:$16 sps:$4 sm:$0xff]   ;;  %v3443_v59 = vld [vmem:[#allocation5 + $0x3a0] ss:$16 sps:$4 sm:$0xff]  }
  0x95   :  { %1719 = vmatpush1.bf16.msra.mxu0 %v3355_v60  ;;  %1883 = vmatpush1.bf16.msra.mxu1 %v3356_v61  ;;  %v3446_v60 = vld [vmem:[#allocation5 + $0x3a8] ss:$16 sps:$4 sm:$0xff]   ;;  %v3451_v61 = vld [vmem:[#allocation5 + $0x3c4] ss:$16 sps:$4 sm:$0xff]  }
  0x96   :  { %1720 = vmatprep.subr.bf16.mxu0 %v3357_v62  ;;  %1884 = vmatprep.subr.bf16.mxu1 %v3359_v63  ;;  %v3454_v62 = vld [vmem:[#allocation5 + $0x3cc] ss:$16 sps:$4 sm:$0xff]   ;;  %v3449_v63 = vld [vmem:[#allocation5 + $0x3c0] ss:$16 sps:$4 sm:$0xff]  }
  0x99   :  { %1721 = vmatpush1.bf16.msra.mxu0 %v3361_v0  ;;  %1885 = vmatpush1.bf16.msra.mxu1 %v3362_v1  ;;  %v3452_v0 = vld [vmem:[#allocation5 + $0x3c8] ss:$16 sps:$4 sm:$0xff]   ;;  %v3457_v1 = vld [vmem:[#allocation5 + $0x3e4] ss:$16 sps:$4 sm:$0xff]  }
  0x9a   :  { %1731 = vmatprep.subr.bf16.mxu0 %v3367_v2  ;;  %1895 = vmatprep.subr.bf16.mxu1 %v3370_v3  ;;  %v3460_v2 = vld [vmem:[#allocation5 + $0x3ec] ss:$16 sps:$4 sm:$0xff]   ;;  %v3455_v3 = vld [vmem:[#allocation5 + $0x3e0] ss:$16 sps:$4 sm:$0xff]  }
  0x9c   :  { %1723 = vmatmul.mubr.bf16.vlgmr.msra.gmra.mrb[0].mxu0 %v2814_v4  ;;  %1887 = vmatmul.mubr.bf16.vlgmr.msra.gmra.mrb[0].mxu1 %v2814_v4  ;;  %v3458_v4 = vld [vmem:[#allocation5 + $0x3e8] ss:$16 sps:$4 sm:$0xff]  }
  0x9d   :  { %1732 = vmatpush1.bf16.msra.mxu0 %v3365_v5  ;;  %1896 = vmatpush1.bf16.msra.mxu1 %v3368_v6  ;;  %v3465_v5 = vld [vmem:[#allocation5 + $0x404] ss:$16 sps:$4 sm:$0xff]   ;;  %v3468_v6 = vld [vmem:[#allocation5 + $0x40c] ss:$16 sps:$4 sm:$0xff]  }
  0x9e   :  { %1733 = vmatprep.subr.bf16.mxu0 %v3373_v7  ;;  %1897 = vmatprep.subr.bf16.mxu1 %v3376_v8  ;;  %v2816_v7 = vcombine.low %v4056_v29, %v4056_v29  ;;  %v3463_v8 = vld [vmem:[#allocation5 + $0x400] ss:$16 sps:$4 sm:$0xff]   ;;  %v3498_v29 = vld [vmem:[#allocation5 + $0x4ac] ss:$16 sps:$4 sm:$0xff]  }
  0x9f   :  { %1763 = vmatprep.mubr.bf16.mxu0 %v2817_v30  ;;  %1927 = vmatprep.mubr.bf16.mxu1 %v2817_v30  ;;  %v3493_v30 = vld [vmem:[#allocation5 + $0x4a0] ss:$16 sps:$4 sm:$0xff]  }
  0xa1   :  { %1734 = vmatpush1.bf16.msra.mxu0 %v3371_v9  ;;  %1898 = vmatpush1.bf16.msra.mxu1 %v3374_v10  ;;  %v3466_v9 = vld [vmem:[#allocation5 + $0x408] ss:$16 sps:$4 sm:$0xff]   ;;  %v3471_v10 = vld [vmem:[#allocation5 + $0x424] ss:$16 sps:$4 sm:$0xff]  }
  0xa2   :  { %1735 = vmatprep.subr.bf16.mxu0 %v3379_v11  ;;  %1899 = vmatprep.subr.bf16.mxu1 %v3382_v12  ;;  %v4062_v11 = vld [vmem:[#allocation2 + $0x10] sm:$0xff]  ;;  %v3474_v12 = vld [vmem:[#allocation5 + $0x42c] ss:$16 sps:$4 sm:$0xff]  }
  0xa5   :  { %1736 = vmatpush1.bf16.msra.mxu0 %v3377_v13  ;;  %1900 = vmatpush1.bf16.msra.mxu1 %v3380_v14  ;;  %v2819_v13 = vcombine.high %v4062_v11, %v4062_v11  ;;  %v3469_v14 = vld [vmem:[#allocation5 + $0x420] ss:$16 sps:$4 sm:$0xff]  }
  0xa6   :  { %1737 = vmatprep.subr.bf16.mxu0 %v3385_v15  ;;  %1901 = vmatprep.subr.bf16.mxu1 %v3388_v16  ;;  %v3472_v15 = vld [vmem:[#allocation5 + $0x428] ss:$16 sps:$4 sm:$0xff]   ;;  %v3477_v16 = vld [vmem:[#allocation5 + $0x444] ss:$16 sps:$4 sm:$0xff]  }
  0xa9   :  { %1738 = vmatpush1.bf16.msra.mxu0 %v3383_v17  ;;  %1902 = vmatpush1.bf16.msra.mxu1 %v3386_v18  ;;  %v3480_v17 = vld [vmem:[#allocation5 + $0x44c] ss:$16 sps:$4 sm:$0xff]   ;;  %v3475_v18 = vld [vmem:[#allocation5 + $0x440] ss:$16 sps:$4 sm:$0xff]  }
  0xaa   :  { %1739 = vmatprep.subr.bf16.mxu0 %v3391_v19  ;;  %1903 = vmatprep.subr.bf16.mxu1 %v3394_v20  ;;  %v3478_v19 = vld [vmem:[#allocation5 + $0x448] ss:$16 sps:$4 sm:$0xff]   ;;  %v3483_v20 = vld [vmem:[#allocation5 + $0x464] ss:$16 sps:$4 sm:$0xff]  }
  0xad   :  { %1740 = vmatpush1.bf16.msra.mxu0 %v3389_v21  ;;  %1904 = vmatpush1.bf16.msra.mxu1 %v3392_v22  ;;  %v3486_v21 = vld [vmem:[#allocation5 + $0x46c] ss:$16 sps:$4 sm:$0xff]   ;;  %v3481_v22 = vld [vmem:[#allocation5 + $0x460] ss:$16 sps:$4 sm:$0xff]  }
  0xae   :  { %1741 = vmatprep.subr.bf16.mxu0 %v3397_v23  ;;  %1905 = vmatprep.subr.bf16.mxu1 %v3400_v24  ;;  %v3484_v23 = vld [vmem:[#allocation5 + $0x468] ss:$16 sps:$4 sm:$0xff]   ;;  %v3489_v24 = vld [vmem:[#allocation5 + $0x484] ss:$16 sps:$4 sm:$0xff]  }
  0xb1   :  { %1742 = vmatpush1.bf16.msra.mxu0 %v3395_v25  ;;  %1906 = vmatpush1.bf16.msra.mxu1 %v3398_v26  ;;  %v3492_v25 = vld [vmem:[#allocation5 + $0x48c] ss:$16 sps:$4 sm:$0xff]   ;;  %v3487_v26 = vld [vmem:[#allocation5 + $0x480] ss:$16 sps:$4 sm:$0xff]  }
  0xb2   :  { %1743 = vmatprep.subr.bf16.mxu0 %v3403_v27  ;;  %1907 = vmatprep.subr.bf16.mxu1 %v3406_v28  ;;  %v3490_v27 = vld [vmem:[#allocation5 + $0x488] ss:$16 sps:$4 sm:$0xff]   ;;  %v3495_v28 = vld [vmem:[#allocation5 + $0x4a4] ss:$16 sps:$4 sm:$0xff]  }
  0xb5   :  { %1744 = vmatpush1.bf16.msra.mxu0 %v3401_v31  ;;  %1908 = vmatpush1.bf16.msra.mxu1 %v3404_v32  ;;  %v3496_v31 = vld [vmem:[#allocation5 + $0x4a8] ss:$16 sps:$4 sm:$0xff]   ;;  %v3501_v32 = vld [vmem:[#allocation5 + $0x4c4] ss:$16 sps:$4 sm:$0xff]  }
  0xb6   :  { %1745 = vmatprep.subr.bf16.mxu0 %v3409_v33  ;;  %1909 = vmatprep.subr.bf16.mxu1 %v3412_v34  ;;  %v3504_v33 = vld [vmem:[#allocation5 + $0x4cc] ss:$16 sps:$4 sm:$0xff]   ;;  %v3499_v34 = vld [vmem:[#allocation5 + $0x4c0] ss:$16 sps:$4 sm:$0xff]  }
  0xb9   :  { %1746 = vmatpush1.bf16.msra.mxu0 %v3407_v35  ;;  %1910 = vmatpush1.bf16.msra.mxu1 %v3410_v36  ;;  %v3502_v35 = vld [vmem:[#allocation5 + $0x4c8] ss:$16 sps:$4 sm:$0xff]   ;;  %v3507_v36 = vld [vmem:[#allocation5 + $0x4e4] ss:$16 sps:$4 sm:$0xff]  }
  0xba   :  { %1747 = vmatprep.subr.bf16.mxu0 %v3415_v37  ;;  %1911 = vmatprep.subr.bf16.mxu1 %v3418_v38  ;;  %v3510_v37 = vld [vmem:[#allocation5 + $0x4ec] ss:$16 sps:$4 sm:$0xff]   ;;  %v3505_v38 = vld [vmem:[#allocation5 + $0x4e0] ss:$16 sps:$4 sm:$0xff]  }
  0xbd   :  { %1748 = vmatpush1.bf16.msra.mxu0 %v3413_v39  ;;  %1912 = vmatpush1.bf16.msra.mxu1 %v3416_v40  ;;  %v3508_v39 = vld [vmem:[#allocation5 + $0x4e8] ss:$16 sps:$4 sm:$0xff]   ;;  %v3513_v40 = vld [vmem:[#allocation5 + $0x504] ss:$16 sps:$4 sm:$0xff]  }
  0xbe   :  { %1749 = vmatprep.subr.bf16.mxu0 %v3421_v41  ;;  %1913 = vmatprep.subr.bf16.mxu1 %v3424_v42  ;;  %v3516_v41 = vld [vmem:[#allocation5 + $0x50c] ss:$16 sps:$4 sm:$0xff]   ;;  %v3511_v42 = vld [vmem:[#allocation5 + $0x500] ss:$16 sps:$4 sm:$0xff]  }
  0xc1   :  { %1750 = vmatpush1.bf16.msra.mxu0 %v3419_v43  ;;  %1914 = vmatpush1.bf16.msra.mxu1 %v3422_v44  ;;  %v3514_v43 = vld [vmem:[#allocation5 + $0x508] ss:$16 sps:$4 sm:$0xff]   ;;  %v3519_v44 = vld [vmem:[#allocation5 + $0x524] ss:$16 sps:$4 sm:$0xff]  }
  0xc2   :  { %1751 = vmatprep.subr.bf16.mxu0 %v3427_v45  ;;  %1915 = vmatprep.subr.bf16.mxu1 %v3430_v46  ;;  %v3522_v45 = vld [vmem:[#allocation5 + $0x52c] ss:$16 sps:$4 sm:$0xff]   ;;  %v3517_v46 = vld [vmem:[#allocation5 + $0x520] ss:$16 sps:$4 sm:$0xff]  }
  0xc5   :  { %1752 = vmatpush1.bf16.msra.mxu0 %v3425_v47  ;;  %1916 = vmatpush1.bf16.msra.mxu1 %v3428_v48  ;;  %v3520_v47 = vld [vmem:[#allocation5 + $0x528] ss:$16 sps:$4 sm:$0xff]   ;;  %v3525_v48 = vld [vmem:[#allocation5 + $0x544] ss:$16 sps:$4 sm:$0xff]  }
  0xc6   :  { %1753 = vmatprep.subr.bf16.mxu0 %v3433_v49  ;;  %1917 = vmatprep.subr.bf16.mxu1 %v3436_v50  ;;  %v3528_v49 = vld [vmem:[#allocation5 + $0x54c] ss:$16 sps:$4 sm:$0xff]   ;;  %v3523_v50 = vld [vmem:[#allocation5 + $0x540] ss:$16 sps:$4 sm:$0xff]  }
  0xc9   :  { %1754 = vmatpush1.bf16.msra.mxu0 %v3431_v51  ;;  %1918 = vmatpush1.bf16.msra.mxu1 %v3434_v52  ;;  %v3526_v51 = vld [vmem:[#allocation5 + $0x548] ss:$16 sps:$4 sm:$0xff]   ;;  %v3531_v52 = vld [vmem:[#allocation5 + $0x564] ss:$16 sps:$4 sm:$0xff]  }
  0xca   :  { %1755 = vmatprep.subr.bf16.mxu0 %v3439_v53  ;;  %1919 = vmatprep.subr.bf16.mxu1 %v3442_v54  ;;  %v3534_v53 = vld [vmem:[#allocation5 + $0x56c] ss:$16 sps:$4 sm:$0xff]   ;;  %v3529_v54 = vld [vmem:[#allocation5 + $0x560] ss:$16 sps:$4 sm:$0xff]  }
  0xcd   :  { %1756 = vmatpush1.bf16.msra.mxu0 %v3437_v55  ;;  %1920 = vmatpush1.bf16.msra.mxu1 %v3440_v56  ;;  %v3532_v55 = vld [vmem:[#allocation5 + $0x568] ss:$16 sps:$4 sm:$0xff]   ;;  %v3537_v56 = vld [vmem:[#allocation5 + $0x584] ss:$16 sps:$4 sm:$0xff]  }
  0xce   :  { %1757 = vmatprep.subr.bf16.mxu0 %v3445_v57  ;;  %1921 = vmatprep.subr.bf16.mxu1 %v3448_v58  ;;  %v3540_v57 = vld [vmem:[#allocation5 + $0x58c] ss:$16 sps:$4 sm:$0xff]   ;;  %v3535_v58 = vld [vmem:[#allocation5 + $0x580] ss:$16 sps:$4 sm:$0xff]  }
  0xd1   :  { %1758 = vmatpush1.bf16.msra.mxu0 %v3443_v59  ;;  %1922 = vmatpush1.bf16.msra.mxu1 %v3446_v60  ;;  %v3538_v59 = vld [vmem:[#allocation5 + $0x588] ss:$16 sps:$4 sm:$0xff]   ;;  %v3543_v60 = vld [vmem:[#allocation5 + $0x5a4] ss:$16 sps:$4 sm:$0xff]  }
  0xd2   :  { %1759 = vmatprep.subr.bf16.mxu0 %v3451_v61  ;;  %1923 = vmatprep.subr.bf16.mxu1 %v3454_v62  ;;  %v3546_v61 = vld [vmem:[#allocation5 + $0x5ac] ss:$16 sps:$4 sm:$0xff]   ;;  %v3541_v62 = vld [vmem:[#allocation5 + $0x5a0] ss:$16 sps:$4 sm:$0xff]  }
  0xd5   :  { %1760 = vmatpush1.bf16.msra.mxu0 %v3449_v63  ;;  %1924 = vmatpush1.bf16.msra.mxu1 %v3452_v0  ;;  %v3544_v63 = vld [vmem:[#allocation5 + $0x5a8] ss:$16 sps:$4 sm:$0xff]   ;;  %v3549_v0 = vld [vmem:[#allocation5 + $0x5c4] ss:$16 sps:$4 sm:$0xff]  }
  0xd6   :  { %1761 = vmatprep.subr.bf16.mxu0 %v3457_v1  ;;  %1925 = vmatprep.subr.bf16.mxu1 %v3460_v2  ;;  %v3552_v1 = vld [vmem:[#allocation5 + $0x5cc] ss:$16 sps:$4 sm:$0xff]   ;;  %v3547_v2 = vld [vmem:[#allocation5 + $0x5c0] ss:$16 sps:$4 sm:$0xff]  }
  0xd9   :  { %1762 = vmatpush1.bf16.msra.mxu0 %v3455_v3  ;;  %1926 = vmatpush1.bf16.msra.mxu1 %v3458_v4  ;;  %v3550_v3 = vld [vmem:[#allocation5 + $0x5c8] ss:$16 sps:$4 sm:$0xff]   ;;  %v3555_v4 = vld [vmem:[#allocation5 + $0x5e4] ss:$16 sps:$4 sm:$0xff]  }
  0xda   :  { %1772 = vmatprep.subr.bf16.mxu0 %v3465_v5  ;;  %1936 = vmatprep.subr.bf16.mxu1 %v3468_v6  ;;  %v3558_v5 = vld [vmem:[#allocation5 + $0x5ec] ss:$16 sps:$4 sm:$0xff]   ;;  %v3553_v6 = vld [vmem:[#allocation5 + $0x5e0] ss:$16 sps:$4 sm:$0xff]  }
  0xdc   :  { %1764 = vmatmul.mubr.bf16.vlgmr.msra.gmra.mrb[0].mxu0 %v2816_v7  ;;  %1928 = vmatmul.mubr.bf16.vlgmr.msra.gmra.mrb[0].mxu1 %v2816_v7  ;;  %v3556_v7 = vld [vmem:[#allocation5 + $0x5e8] ss:$16 sps:$4 sm:$0xff]  }
  0xdd   :  { %1773 = vmatpush1.bf16.msra.mxu0 %v3463_v8  ;;  %1937 = vmatpush1.bf16.msra.mxu1 %v3466_v9  ;;  %v3563_v8 = vld [vmem:[#allocation5 + $0x604] ss:$16 sps:$4 sm:$0xff]   ;;  %v3566_v9 = vld [vmem:[#allocation5 + $0x60c] ss:$16 sps:$4 sm:$0xff]  }
  0xde   :  { %1774 = vmatprep.subr.bf16.mxu0 %v3471_v10  ;;  %1938 = vmatprep.subr.bf16.mxu1 %v3474_v12  ;;  %v3561_v10 = vld [vmem:[#allocation5 + $0x600] ss:$16 sps:$4 sm:$0xff]   ;;  %v3564_v12 = vld [vmem:[#allocation5 + $0x608] ss:$16 sps:$4 sm:$0xff]  }
  0xdf   :  { %1804 = vmatprep.mubr.bf16.mxu0 %v2819_v13  ;;  %1968 = vmatprep.mubr.bf16.mxu1 %v2819_v13  ;;  %v4066_v13 = vld [vmem:[#allocation2 + $0x18] sm:$0xff] }
  0xe1   :  { %1775 = vmatpush1.bf16.msra.mxu0 %v3469_v14  ;;  %1939 = vmatpush1.bf16.msra.mxu1 %v3472_v15  ;;  %v2818_v14 = vcombine.low %v4062_v11, %v4062_v11  ;;  %v3569_v15 = vld [vmem:[#allocation5 + $0x624] ss:$16 sps:$4 sm:$0xff]   ;;  %v3573_v11 = vld [vmem:[#allocation5 + $0x640] ss:$16 sps:$4 sm:$0xff]  }
  0xe2   :  { %1776 = vmatprep.subr.bf16.mxu0 %v3477_v16  ;;  %1940 = vmatprep.subr.bf16.mxu1 %v3480_v17  ;;  %v3572_v16 = vld [vmem:[#allocation5 + $0x62c] ss:$16 sps:$4 sm:$0xff]   ;;  %v3567_v17 = vld [vmem:[#allocation5 + $0x620] ss:$16 sps:$4 sm:$0xff]  }
  0xe5   :  { %1777 = vmatpush1.bf16.msra.mxu0 %v3475_v18  ;;  %1941 = vmatpush1.bf16.msra.mxu1 %v3478_v19  ;;  %v3570_v18 = vld [vmem:[#allocation5 + $0x628] ss:$16 sps:$4 sm:$0xff]   ;;  %v2821_v19 = vcombine.high %v4066_v13, %v4066_v13 }
  0xe6   :  { %1778 = vmatprep.subr.bf16.mxu0 %v3483_v20  ;;  %1942 = vmatprep.subr.bf16.mxu1 %v3486_v21  ;;  %v3575_v20 = vld [vmem:[#allocation5 + $0x644] ss:$16 sps:$4 sm:$0xff]   ;;  %v3578_v21 = vld [vmem:[#allocation5 + $0x64c] ss:$16 sps:$4 sm:$0xff]  }
  0xe9   :  { %1779 = vmatpush1.bf16.msra.mxu0 %v3481_v22  ;;  %1943 = vmatpush1.bf16.msra.mxu1 %v3484_v23  ;;  %v3576_v22 = vld [vmem:[#allocation5 + $0x648] ss:$16 sps:$4 sm:$0xff]   ;;  %v3581_v23 = vld [vmem:[#allocation5 + $0x664] ss:$16 sps:$4 sm:$0xff]  }
  0xea   :  { %1780 = vmatprep.subr.bf16.mxu0 %v3489_v24  ;;  %1944 = vmatprep.subr.bf16.mxu1 %v3492_v25  ;;  %v3584_v24 = vld [vmem:[#allocation5 + $0x66c] ss:$16 sps:$4 sm:$0xff]   ;;  %v3579_v25 = vld [vmem:[#allocation5 + $0x660] ss:$16 sps:$4 sm:$0xff]  }
  0xed   :  { %1781 = vmatpush1.bf16.msra.mxu0 %v3487_v26  ;;  %1945 = vmatpush1.bf16.msra.mxu1 %v3490_v27  ;;  %v3582_v26 = vld [vmem:[#allocation5 + $0x668] ss:$16 sps:$4 sm:$0xff]   ;;  %v3587_v27 = vld [vmem:[#allocation5 + $0x684] ss:$16 sps:$4 sm:$0xff]  }
  0xee   :  { %1782 = vmatprep.subr.bf16.mxu0 %v3495_v28  ;;  %1946 = vmatprep.subr.bf16.mxu1 %v3498_v29  ;;  %v3590_v28 = vld [vmem:[#allocation5 + $0x68c] ss:$16 sps:$4 sm:$0xff]   ;;  %v3585_v29 = vld [vmem:[#allocation5 + $0x680] ss:$16 sps:$4 sm:$0xff]  }
  0xf1   :  { %1783 = vmatpush1.bf16.msra.mxu0 %v3493_v30  ;;  %1947 = vmatpush1.bf16.msra.mxu1 %v3496_v31  ;;  %v3588_v30 = vld [vmem:[#allocation5 + $0x688] ss:$16 sps:$4 sm:$0xff]   ;;  %v3593_v31 = vld [vmem:[#allocation5 + $0x6a4] ss:$16 sps:$4 sm:$0xff]  }
  0xf2   :  { %1784 = vmatprep.subr.bf16.mxu0 %v3501_v32  ;;  %1948 = vmatprep.subr.bf16.mxu1 %v3504_v33  ;;  %v3596_v32 = vld [vmem:[#allocation5 + $0x6ac] ss:$16 sps:$4 sm:$0xff]   ;;  %v3591_v33 = vld [vmem:[#allocation5 + $0x6a0] ss:$16 sps:$4 sm:$0xff]  }
  0xf5   :  { %1785 = vmatpush1.bf16.msra.mxu0 %v3499_v34  ;;  %1949 = vmatpush1.bf16.msra.mxu1 %v3502_v35  ;;  %v3594_v34 = vld [vmem:[#allocation5 + $0x6a8] ss:$16 sps:$4 sm:$0xff]   ;;  %v3599_v35 = vld [vmem:[#allocation5 + $0x6c4] ss:$16 sps:$4 sm:$0xff]  }
  0xf6   :  { %1786 = vmatprep.subr.bf16.mxu0 %v3507_v36  ;;  %1950 = vmatprep.subr.bf16.mxu1 %v3510_v37  ;;  %v3602_v36 = vld [vmem:[#allocation5 + $0x6cc] ss:$16 sps:$4 sm:$0xff]   ;;  %v3597_v37 = vld [vmem:[#allocation5 + $0x6c0] ss:$16 sps:$4 sm:$0xff]  }
  0xf9   :  { %1787 = vmatpush1.bf16.msra.mxu0 %v3505_v38  ;;  %1951 = vmatpush1.bf16.msra.mxu1 %v3508_v39  ;;  %v3600_v38 = vld [vmem:[#allocation5 + $0x6c8] ss:$16 sps:$4 sm:$0xff]   ;;  %v3605_v39 = vld [vmem:[#allocation5 + $0x6e4] ss:$16 sps:$4 sm:$0xff]  }
  0xfa   :  { %1788 = vmatprep.subr.bf16.mxu0 %v3513_v40  ;;  %1952 = vmatprep.subr.bf16.mxu1 %v3516_v41  ;;  %v3608_v40 = vld [vmem:[#allocation5 + $0x6ec] ss:$16 sps:$4 sm:$0xff]   ;;  %v3603_v41 = vld [vmem:[#allocation5 + $0x6e0] ss:$16 sps:$4 sm:$0xff]  }
  0xfd   :  { %1789 = vmatpush1.bf16.msra.mxu0 %v3511_v42  ;;  %1953 = vmatpush1.bf16.msra.mxu1 %v3514_v43  ;;  %v3606_v42 = vld [vmem:[#allocation5 + $0x6e8] ss:$16 sps:$4 sm:$0xff]   ;;  %v3611_v43 = vld [vmem:[#allocation5 + $0x704] ss:$16 sps:$4 sm:$0xff]  }
  0xfe   :  { %1790 = vmatprep.subr.bf16.mxu0 %v3519_v44  ;;  %1954 = vmatprep.subr.bf16.mxu1 %v3522_v45  ;;  %v3614_v44 = vld [vmem:[#allocation5 + $0x70c] ss:$16 sps:$4 sm:$0xff]   ;;  %v3609_v45 = vld [vmem:[#allocation5 + $0x700] ss:$16 sps:$4 sm:$0xff]  }
 0x101   :  { %1791 = vmatpush1.bf16.msra.mxu0 %v3517_v46  ;;  %1955 = vmatpush1.bf16.msra.mxu1 %v3520_v47  ;;  %v3612_v46 = vld [vmem:[#allocation5 + $0x708] ss:$16 sps:$4 sm:$0xff]   ;;  %v3617_v47 = vld [vmem:[#allocation5 + $0x724] ss:$16 sps:$4 sm:$0xff]  }
 0x102   :  { %1792 = vmatprep.subr.bf16.mxu0 %v3525_v48  ;;  %1956 = vmatprep.subr.bf16.mxu1 %v3528_v49  ;;  %v3620_v48 = vld [vmem:[#allocation5 + $0x72c] ss:$16 sps:$4 sm:$0xff]   ;;  %v3615_v49 = vld [vmem:[#allocation5 + $0x720] ss:$16 sps:$4 sm:$0xff]  }
 0x105   :  { %1793 = vmatpush1.bf16.msra.mxu0 %v3523_v50  ;;  %1957 = vmatpush1.bf16.msra.mxu1 %v3526_v51  ;;  %v3618_v50 = vld [vmem:[#allocation5 + $0x728] ss:$16 sps:$4 sm:$0xff]   ;;  %v3623_v51 = vld [vmem:[#allocation5 + $0x744] ss:$16 sps:$4 sm:$0xff]  }
 0x106   :  { %1794 = vmatprep.subr.bf16.mxu0 %v3531_v52  ;;  %1958 = vmatprep.subr.bf16.mxu1 %v3534_v53  ;;  %v3626_v52 = vld [vmem:[#allocation5 + $0x74c] ss:$16 sps:$4 sm:$0xff]   ;;  %v3621_v53 = vld [vmem:[#allocation5 + $0x740] ss:$16 sps:$4 sm:$0xff]  }
 0x109   :  { %1795 = vmatpush1.bf16.msra.mxu0 %v3529_v54  ;;  %1959 = vmatpush1.bf16.msra.mxu1 %v3532_v55  ;;  %v3624_v54 = vld [vmem:[#allocation5 + $0x748] ss:$16 sps:$4 sm:$0xff]   ;;  %v3629_v55 = vld [vmem:[#allocation5 + $0x764] ss:$16 sps:$4 sm:$0xff]  }
 0x10a   :  { %1796 = vmatprep.subr.bf16.mxu0 %v3537_v56  ;;  %1960 = vmatprep.subr.bf16.mxu1 %v3540_v57  ;;  %v3632_v56 = vld [vmem:[#allocation5 + $0x76c] ss:$16 sps:$4 sm:$0xff]   ;;  %v3627_v57 = vld [vmem:[#allocation5 + $0x760] ss:$16 sps:$4 sm:$0xff]  }
 0x10d   :  { %1797 = vmatpush1.bf16.msra.mxu0 %v3535_v58  ;;  %1961 = vmatpush1.bf16.msra.mxu1 %v3538_v59  ;;  %v3630_v58 = vld [vmem:[#allocation5 + $0x768] ss:$16 sps:$4 sm:$0xff]   ;;  %v3635_v59 = vld [vmem:[#allocation5 + $0x784] ss:$16 sps:$4 sm:$0xff]  }
 0x10e   :  { %1798 = vmatprep.subr.bf16.mxu0 %v3543_v60  ;;  %1962 = vmatprep.subr.bf16.mxu1 %v3546_v61  ;;  %v3638_v60 = vld [vmem:[#allocation5 + $0x78c] ss:$16 sps:$4 sm:$0xff]   ;;  %v3633_v61 = vld [vmem:[#allocation5 + $0x780] ss:$16 sps:$4 sm:$0xff]  }
 0x111   :  { %1799 = vmatpush1.bf16.msra.mxu0 %v3541_v62  ;;  %1963 = vmatpush1.bf16.msra.mxu1 %v3544_v63  ;;  %v3636_v62 = vld [vmem:[#allocation5 + $0x788] ss:$16 sps:$4 sm:$0xff]   ;;  %v3641_v63 = vld [vmem:[#allocation5 + $0x7a4] ss:$16 sps:$4 sm:$0xff]  }
 0x112   :  { %1800 = vmatprep.subr.bf16.mxu0 %v3549_v0  ;;  %1964 = vmatprep.subr.bf16.mxu1 %v3552_v1  ;;  %v3644_v0 = vld [vmem:[#allocation5 + $0x7ac] ss:$16 sps:$4 sm:$0xff]   ;;  %v3639_v1 = vld [vmem:[#allocation5 + $0x7a0] ss:$16 sps:$4 sm:$0xff]  }
 0x115   :  { %1801 = vmatpush1.bf16.msra.mxu0 %v3547_v2  ;;  %1965 = vmatpush1.bf16.msra.mxu1 %v3550_v3  ;;  %v3642_v2 = vld [vmem:[#allocation5 + $0x7a8] ss:$16 sps:$4 sm:$0xff]   ;;  %v3647_v3 = vld [vmem:[#allocation5 + $0x7c4] ss:$16 sps:$4 sm:$0xff]  }
 0x116   :  { %1802 = vmatprep.subr.bf16.mxu0 %v3555_v4  ;;  %1966 = vmatprep.subr.bf16.mxu1 %v3558_v5  ;;  %v3650_v4 = vld [vmem:[#allocation5 + $0x7cc] ss:$16 sps:$4 sm:$0xff]   ;;  %v3645_v5 = vld [vmem:[#allocation5 + $0x7c0] ss:$16 sps:$4 sm:$0xff]  }
 0x119   :  { %1803 = vmatpush1.bf16.msra.mxu0 %v3553_v6  ;;  %1967 = vmatpush1.bf16.msra.mxu1 %v3556_v7  ;;  %v3648_v6 = vld [vmem:[#allocation5 + $0x7c8] ss:$16 sps:$4 sm:$0xff]   ;;  %v3653_v7 = vld [vmem:[#allocation5 + $0x7e4] ss:$16 sps:$4 sm:$0xff]  }
 0x11a   :  { %1813 = vmatprep.subr.bf16.mxu0 %v3563_v8  ;;  %1977 = vmatprep.subr.bf16.mxu1 %v3566_v9  ;;  %v3656_v8 = vld [vmem:[#allocation5 + $0x7ec] ss:$16 sps:$4 sm:$0xff]   ;;  %v3651_v9 = vld [vmem:[#allocation5 + $0x7e0] ss:$16 sps:$4 sm:$0xff]  }
 0x11c   :  { %1805 = vmatmul.mubr.bf16.vlgmr.msra.gmra.mrb[0].mxu0 %v2818_v14  ;;  %1969 = vmatmul.mubr.bf16.vlgmr.msra.gmra.mrb[0].mxu1 %v2818_v14  ;;  %v2820_v14 = vcombine.low %v4066_v13, %v4066_v13  ;;  %v3671_v13 = vld [vmem:[#allocation7 + $0x40] ss:$8 sps:$4 sm:$0xff]  }
 0x11d   :  { %1814 = vmatpush1.bf16.msra.mxu0 %v3561_v10  ;;  %1978 = vmatpush1.bf16.msra.mxu1 %v3564_v12  ;;  %v3654_v10 = vld [vmem:[#allocation5 + $0x7e8] ss:$16 sps:$4 sm:$0xff]   ;;  %v3661_v12 = vld [vmem:[#allocation7 + $0x4] ss:$8 sps:$4 sm:$0xff]  }
 0x11e   :  { %1815 = vmatprep.subr.bf16.mxu0 %v3569_v15  ;;  %1979 = vmatprep.subr.bf16.mxu1 %v3572_v16  ;;  %v3659_v15 = vld [vmem:[#allocation7] ss:$8 sps:$4 sm:$0xff]   ;;  %v3664_v16 = vld [vmem:[#allocation7 + $0x14] ss:$8 sps:$4 sm:$0xff]  }
 0x11f   :  { %1845 = vmatprep.mubr.bf16.mxu0 %v2821_v19  ;;  %2009 = vmatprep.mubr.bf16.mxu1 %v2821_v19  ;;  %v3665_v19 = vld [vmem:[#allocation7 + $0x20] ss:$8 sps:$4 sm:$0xff]  }
 0x121   :  { %1816 = vmatpush1.bf16.msra.mxu0 %v3567_v17  ;;  %1980 = vmatpush1.bf16.msra.mxu1 %v3570_v18  ;;  %v3662_v17 = vld [vmem:[#allocation7 + $0x10] ss:$8 sps:$4 sm:$0xff]   ;;  %v3667_v18 = vld [vmem:[#allocation7 + $0x24] ss:$8 sps:$4 sm:$0xff]  }
 0x122   :  { %1817 = vmatprep.subr.bf16.mxu0 %v3575_v20  ;;  %1981 = vmatprep.subr.bf16.mxu1 %v3578_v21  ;;  %v3670_v20 = vld [vmem:[#allocation7 + $0x34] ss:$8 sps:$4 sm:$0xff]   ;;  %v3668_v21 = vld [vmem:[#allocation7 + $0x30] ss:$8 sps:$4 sm:$0xff]  }
 0x125   :  { %1818 = vmatpush1.bf16.msra.mxu0 %v3573_v11  ;;  %1982 = vmatpush1.bf16.msra.mxu1 %v3576_v22  ;;  %v3673_v11 = vld [vmem:[#allocation7 + $0x44] ss:$8 sps:$4 sm:$0xff]   ;;  %v3676_v22 = vld [vmem:[#allocation7 + $0x54] ss:$8 sps:$4 sm:$0xff]  }
 0x126   :  { %1819 = vmatprep.subr.bf16.mxu0 %v3581_v23  ;;  %1983 = vmatprep.subr.bf16.mxu1 %v3584_v24  ;;  %v3674_v23 = vld [vmem:[#allocation7 + $0x50] ss:$8 sps:$4 sm:$0xff]   ;;  %v3679_v24 = vld [vmem:[#allocation7 + $0x64] ss:$8 sps:$4 sm:$0xff]  }
 0x129   :  { %1820 = vmatpush1.bf16.msra.mxu0 %v3579_v25  ;;  %1984 = vmatpush1.bf16.msra.mxu1 %v3582_v26  ;;  %v3677_v25 = vld [vmem:[#allocation7 + $0x60] ss:$8 sps:$4 sm:$0xff]   ;;  %v3682_v26 = vld [vmem:[#allocation7 + $0x74] ss:$8 sps:$4 sm:$0xff]  }
 0x12a   :  { %1821 = vmatprep.subr.bf16.mxu0 %v3587_v27  ;;  %1985 = vmatprep.subr.bf16.mxu1 %v3590_v28  ;;  %v3680_v27 = vld [vmem:[#allocation7 + $0x70] ss:$8 sps:$4 sm:$0xff]   ;;  %v3685_v28 = vld [vmem:[#allocation7 + $0x84] ss:$8 sps:$4 sm:$0xff]  }
 0x12d   :  { %1822 = vmatpush1.bf16.msra.mxu0 %v3585_v29  ;;  %1986 = vmatpush1.bf16.msra.mxu1 %v3588_v30  ;;  %v3683_v29 = vld [vmem:[#allocation7 + $0x80] ss:$8 sps:$4 sm:$0xff]   ;;  %v3688_v30 = vld [vmem:[#allocation7 + $0x94] ss:$8 sps:$4 sm:$0xff]  }
 0x12e   :  { %1823 = vmatprep.subr.bf16.mxu0 %v3593_v31  ;;  %1987 = vmatprep.subr.bf16.mxu1 %v3596_v32  ;;  %v3686_v31 = vld [vmem:[#allocation7 + $0x90] ss:$8 sps:$4 sm:$0xff]   ;;  %v3691_v32 = vld [vmem:[#allocation7 + $0xa4] ss:$8 sps:$4 sm:$0xff]  }
 0x131   :  { %1824 = vmatpush1.bf16.msra.mxu0 %v3591_v33  ;;  %1988 = vmatpush1.bf16.msra.mxu1 %v3594_v34  ;;  %v3689_v33 = vld [vmem:[#allocation7 + $0xa0] ss:$8 sps:$4 sm:$0xff]   ;;  %v3694_v34 = vld [vmem:[#allocation7 + $0xb4] ss:$8 sps:$4 sm:$0xff]  }
 0x132   :  { %1825 = vmatprep.subr.bf16.mxu0 %v3599_v35  ;;  %1989 = vmatprep.subr.bf16.mxu1 %v3602_v36  ;;  %v3692_v35 = vld [vmem:[#allocation7 + $0xb0] ss:$8 sps:$4 sm:$0xff]   ;;  %v3697_v36 = vld [vmem:[#allocation7 + $0xc4] ss:$8 sps:$4 sm:$0xff]  }
 0x135   :  { %1826 = vmatpush1.bf16.msra.mxu0 %v3597_v37  ;;  %1990 = vmatpush1.bf16.msra.mxu1 %v3600_v38  ;;  %v3695_v37 = vld [vmem:[#allocation7 + $0xc0] ss:$8 sps:$4 sm:$0xff]   ;;  %v3700_v38 = vld [vmem:[#allocation7 + $0xd4] ss:$8 sps:$4 sm:$0xff]  }
 0x136   :  { %1827 = vmatprep.subr.bf16.mxu0 %v3605_v39  ;;  %1991 = vmatprep.subr.bf16.mxu1 %v3608_v40  ;;  %v3698_v39 = vld [vmem:[#allocation7 + $0xd0] ss:$8 sps:$4 sm:$0xff]   ;;  %v3703_v40 = vld [vmem:[#allocation7 + $0xe4] ss:$8 sps:$4 sm:$0xff]  }
 0x139   :  { %1828 = vmatpush1.bf16.msra.mxu0 %v3603_v41  ;;  %1992 = vmatpush1.bf16.msra.mxu1 %v3606_v42  ;;  %v3701_v41 = vld [vmem:[#allocation7 + $0xe0] ss:$8 sps:$4 sm:$0xff]   ;;  %v3706_v42 = vld [vmem:[#allocation7 + $0xf4] ss:$8 sps:$4 sm:$0xff]  }
 0x13a   :  { %1829 = vmatprep.subr.bf16.mxu0 %v3611_v43  ;;  %1993 = vmatprep.subr.bf16.mxu1 %v3614_v44  ;;  %v3704_v43 = vld [vmem:[#allocation7 + $0xf0] ss:$8 sps:$4 sm:$0xff]   ;;  %v3709_v44 = vld [vmem:[#allocation7 + $0x104] ss:$8 sps:$4 sm:$0xff]  }
 0x13d   :  { %1830 = vmatpush1.bf16.msra.mxu0 %v3609_v45  ;;  %1994 = vmatpush1.bf16.msra.mxu1 %v3612_v46  ;;  %v3755_v45 = vld [vmem:[#allocation8 + $0x40] sm:$0xff]  }
 0x13e   :  { %1831 = vmatprep.subr.bf16.mxu0 %v3617_v47  ;;  %1995 = vmatprep.subr.bf16.mxu1 %v3620_v48  ;;  %v3756_v46 = vld [vmem:[#allocation8] sm:$0xff]   ;;  %v3757_v47 = vld [vmem:[#allocation8 + $0x48] sm:$0xff]  }
 0x13f   :  { %v3758_v48 = vld [vmem:[#allocation8 + $0x8] sm:$0xff]  }
 0x141   :  { %1832 = vmatpush1.bf16.msra.mxu0 %v3615_v49  ;;  %1996 = vmatpush1.bf16.msra.mxu1 %v3618_v50  ;;  %v3759_v49 = vld [vmem:[#allocation8 + $0x50] sm:$0xff]  }
 0x142   :  { %1833 = vmatprep.subr.bf16.mxu0 %v3623_v51  ;;  %1997 = vmatprep.subr.bf16.mxu1 %v3626_v52  ;;  %v3760_v50 = vld [vmem:[#allocation8 + $0x10] sm:$0xff]   ;;  %v3761_v51 = vld [vmem:[#allocation8 + $0x58] sm:$0xff]  }
 0x143   :  { %v3762_v52 = vld [vmem:[#allocation8 + $0x18] sm:$0xff]  }
 0x145   :  { %1834 = vmatpush1.bf16.msra.mxu0 %v3621_v53  ;;  %1998 = vmatpush1.bf16.msra.mxu1 %v3624_v54  ;;  %v3763_v53 = vld [vmem:[#allocation8 + $0x60] sm:$0xff]  }
 0x146   :  { %1835 = vmatprep.subr.bf16.mxu0 %v3629_v55  ;;  %1999 = vmatprep.subr.bf16.mxu1 %v3632_v56  ;;  %v3764_v54 = vld [vmem:[#allocation8 + $0x20] sm:$0xff]   ;;  %v3765_v55 = vld [vmem:[#allocation8 + $0x68] sm:$0xff]  }
 0x147   :  { %v3766_v56 = vld [vmem:[#allocation8 + $0x28] sm:$0xff]  }
 0x149   :  { %1836 = vmatpush1.bf16.msra.mxu0 %v3627_v57  ;;  %2000 = vmatpush1.bf16.msra.mxu1 %v3630_v58  ;;  %v362_v57 = vlaneseq }
 0x14a   :  { %1837 = vmatprep.subr.bf16.mxu0 %v3635_v59  ;;  %2001 = vmatprep.subr.bf16.mxu1 %v3638_v60  ;;  %v4080_v60 = vld [vmem:[%s4123_s2] sm:$0xf] }
 0x14b   :  { %v4074_v58 = vshrl.u32 %v362_v57, 7  ;;  %v3769_v57 = vld [vmem:[#allocation8 + $0x78] sm:$0xff]  }
 0x14d   :  { %1838 = vmatpush1.bf16.msra.mxu0 %v3633_v61  ;;  %2002 = vmatpush1.bf16.msra.mxu1 %v3636_v62  ;;  %v364_v59 = vsub.s32 0, %v4074_v58  ;;  %v368_v61 = vsub.s32 1, %v4074_v58  ;;  %v376_v62 = vsub.s32 3, %v4074_v58 }
 0x14e   :  { %1839 = vmatprep.subr.bf16.mxu0 %v3641_v63  ;;  %2003 = vmatprep.subr.bf16.mxu1 %v3644_v0 }
 0x14f   :  { %v365_v63 = vrot.slane %v4080_v60, %v364_v59  ;;  %v369_v0 = vrot.slane %v4080_v60, %v368_v61 }
 0x151   :  { %1840 = vmatpush1.bf16.msra.mxu0 %v3639_v1  ;;  %2004 = vmatpush1.bf16.msra.mxu1 %v3642_v2  ;;  %v377_v1 = vrot.slane %v4080_v60, %v376_v62  ;;  %v3930_v62 = vmov 0.0  }
 0x152   :  { %1841 = vmatprep.subr.bf16.mxu0 %v3647_v3  ;;  %2005 = vmatprep.subr.bf16.mxu1 %v3650_v4 }
 0x155   :  { %1842 = vmatpush1.bf16.msra.mxu0 %v3645_v5  ;;  %2006 = vmatpush1.bf16.msra.mxu1 %v3648_v6 }
 0x156   :  { %1843 = vmatprep.subr.bf16.mxu0 %v3653_v7  ;;  %2007 = vmatprep.subr.bf16.mxu1 %v3656_v8 }
 0x159   :  { %1844 = vmatpush1.bf16.msra.mxu0 %v3651_v9  ;;  %2008 = vmatpush1.bf16.msra.mxu1 %v3654_v10 }
 0x15a   :  { %2422 = vmatprep.subr.bf16.mxu0 %v3661_v12  ;;  %3168 = vmatprep.subr.bf16.mxu1 %v3755_v45  ;;  %v3748_v45 = vld [vmem:[#allocation7 + $0x1d4] ss:$8 sps:$4 sm:$0xff]  }
 0x15c   :  { %1846 = vmatmul.mubr.bf16.vlgmr.msra.gmra.mrb[0].mxu0 %v2820_v14  ;;  %2010 = vmatmul.mubr.bf16.vlgmr.msra.gmra.mrb[0].mxu1 %v2820_v14 }
 0x15d   :  { %2423 = vmatpush1.bf16.msra.mxu0 %v3659_v15  ;;  %3169 = vmatpush3.bf16.msra.mxu1 %v3756_v46  ;;  %v3746_v46 = vld [vmem:[#allocation7 + $0x1d0] ss:$8 sps:$4 sm:$0xff]  }
 0x15e   :  { %2424 = vmatprep.subr.bf16.mxu0 %v3664_v16  ;;  %3170 = vmatprep.subr.bf16.mxu1 %v3757_v47 }
 0x161   :  { %2425 = vmatpush1.bf16.msra.mxu0 %v3662_v17  ;;  %3171 = vmatpush3.bf16.msra.mxu1 %v3758_v48  ;;  %v3751_v48 = vld [vmem:[#allocation7 + $0x1e4] ss:$8 sps:$4 sm:$0xff]  }
 0x162   :  { %2426 = vmatprep.subr.bf16.mxu0 %v3667_v18  ;;  %3172 = vmatprep.subr.bf16.mxu1 %v3759_v49  ;;  %v3749_v49 = vld [vmem:[#allocation7 + $0x1e0] ss:$8 sps:$4 sm:$0xff]  }
 0x165   :  { %2427 = vmatpush1.bf16.msra.mxu0 %v3665_v19  ;;  %3173 = vmatpush3.bf16.msra.mxu1 %v3760_v50  ;;  %v3707_v19 = vld [vmem:[#allocation7 + $0x100] ss:$8 sps:$4 sm:$0xff]  }
 0x166   :  { %2428 = vmatprep.subr.bf16.mxu0 %v3670_v20  ;;  %3174 = vmatprep.subr.bf16.mxu1 %v3761_v51  ;;  %v3754_v51 = vld [vmem:[#allocation7 + $0x1f4] ss:$8 sps:$4 sm:$0xff]  }
 0x169   :  { %2429 = vmatpush1.bf16.msra.mxu0 %v3668_v21  ;;  %3175 = vmatpush3.bf16.msra.mxu1 %v3762_v52  ;;  %v3712_v21 = vld [vmem:[#allocation7 + $0x114] ss:$8 sps:$4 sm:$0xff]   ;;  %v3752_v52 = vld [vmem:[#allocation7 + $0x1f0] ss:$8 sps:$4 sm:$0xff]  }
 0x16a   :  { %2430 = vmatprep.subr.bf16.mxu0 %v3673_v11  ;;  %3176 = vmatprep.subr.bf16.mxu1 %v3763_v53 }
 0x16d   :  { %2431 = vmatpush1.bf16.msra.mxu0 %v3671_v13  ;;  %3177 = vmatpush3.bf16.msra.mxu1 %v3764_v54  ;;  %v3710_v13 = vld [vmem:[#allocation7 + $0x110] ss:$8 sps:$4 sm:$0xff]  }
 0x16e   :  { %2432 = vmatprep.subr.bf16.mxu0 %v3676_v22  ;;  %3178 = vmatprep.subr.bf16.mxu1 %v3765_v55  ;;  %v3715_v22 = vld [vmem:[#allocation7 + $0x124] ss:$8 sps:$4 sm:$0xff]   ;;  %v3767_v55 = vld [vmem:[#allocation8 + $0x70] sm:$0xff]  }
 0x171   :  { %2433 = vmatpush1.bf16.msra.mxu0 %v3674_v23  ;;  %3179 = vmatpush3.bf16.msra.mxu1 %v3766_v56  ;;  %v3713_v23 = vld [vmem:[#allocation7 + $0x120] ss:$8 sps:$4 sm:$0xff]   ;;  %v3768_v56 = vld [vmem:[#allocation8 + $0x30] sm:$0xff]  }
 0x172   :  { %2434 = vmatprep.subr.bf16.mxu0 %v3679_v24  ;;  %v3718_v24 = vld [vmem:[#allocation7 + $0x134] ss:$8 sps:$4 sm:$0xff]   ;;  %3180 = vmatprep.subr.bf16.mxu1 %v3767_v55 }
 0x175   :  { %2435 = vmatpush1.bf16.msra.mxu0 %v3677_v25  ;;  %v3716_v25 = vld [vmem:[#allocation7 + $0x130] ss:$8 sps:$4 sm:$0xff]   ;;  %3181 = vmatpush3.bf16.msra.mxu1 %v3768_v56 }
 0x176   :  { %2436 = vmatprep.subr.bf16.mxu0 %v3682_v26  ;;  %v3721_v26 = vld [vmem:[#allocation7 + $0x144] ss:$8 sps:$4 sm:$0xff]   ;;  %3182 = vmatprep.subr.bf16.mxu1 %v3769_v57 }
 0x179   :  { %2437 = vmatpush1.bf16.msra.mxu0 %v3680_v27  ;;  %v3719_v27 = vld [vmem:[#allocation7 + $0x140] ss:$8 sps:$4 sm:$0xff]  }
 0x17a   :  { %2438 = vmatprep.subr.bf16.mxu0 %v3685_v28  ;;  %v3724_v28 = vld [vmem:[#allocation7 + $0x154] ss:$8 sps:$4 sm:$0xff]  }
 0x17d   :  { %2439 = vmatpush1.bf16.msra.mxu0 %v3683_v29  ;;  %v3722_v29 = vld [vmem:[#allocation7 + $0x150] ss:$8 sps:$4 sm:$0xff]  }
 0x17e   :  { %2440 = vmatprep.subr.bf16.mxu0 %v3688_v30  ;;  %v3727_v30 = vld [vmem:[#allocation7 + $0x164] ss:$8 sps:$4 sm:$0xff]  }
 0x181   :  { %2441 = vmatpush1.bf16.msra.mxu0 %v3686_v31  ;;  %v3725_v31 = vld [vmem:[#allocation7 + $0x160] ss:$8 sps:$4 sm:$0xff]  }
 0x182   :  { %2442 = vmatprep.subr.bf16.mxu0 %v3691_v32  ;;  %v3730_v32 = vld [vmem:[#allocation7 + $0x174] ss:$8 sps:$4 sm:$0xff]  }
 0x185   :  { %2443 = vmatpush1.bf16.msra.mxu0 %v3689_v33  ;;  %v3728_v33 = vld [vmem:[#allocation7 + $0x170] ss:$8 sps:$4 sm:$0xff]  }
 0x186   :  { %2444 = vmatprep.subr.bf16.mxu0 %v3694_v34  ;;  %v3733_v34 = vld [vmem:[#allocation7 + $0x184] ss:$8 sps:$4 sm:$0xff]  }
 0x189   :  { %2445 = vmatpush1.bf16.msra.mxu0 %v3692_v35  ;;  %v3731_v35 = vld [vmem:[#allocation7 + $0x180] ss:$8 sps:$4 sm:$0xff]  }
 0x18a   :  { %2446 = vmatprep.subr.bf16.mxu0 %v3697_v36  ;;  %v3736_v36 = vld [vmem:[#allocation7 + $0x194] ss:$8 sps:$4 sm:$0xff]  }
 0x18d   :  { %2447 = vmatpush1.bf16.msra.mxu0 %v3695_v37  ;;  %v3734_v37 = vld [vmem:[#allocation7 + $0x190] ss:$8 sps:$4 sm:$0xff]  }
 0x18e   :  { %2448 = vmatprep.subr.bf16.mxu0 %v3700_v38  ;;  %v3739_v38 = vld [vmem:[#allocation7 + $0x1a4] ss:$8 sps:$4 sm:$0xff]  }
 0x191   :  { %2449 = vmatpush1.bf16.msra.mxu0 %v3698_v39  ;;  %v3737_v39 = vld [vmem:[#allocation7 + $0x1a0] ss:$8 sps:$4 sm:$0xff]  }
 0x192   :  { %2450 = vmatprep.subr.bf16.mxu0 %v3703_v40  ;;  %v3742_v40 = vld [vmem:[#allocation7 + $0x1b4] ss:$8 sps:$4 sm:$0xff]  }
 0x195   :  { %2451 = vmatpush1.bf16.msra.mxu0 %v3701_v41  ;;  %v3740_v41 = vld [vmem:[#allocation7 + $0x1b0] ss:$8 sps:$4 sm:$0xff]  }
 0x196   :  { %2452 = vmatprep.subr.bf16.mxu0 %v3706_v42  ;;  %v3745_v42 = vld [vmem:[#allocation7 + $0x1c4] ss:$8 sps:$4 sm:$0xff]  }
 0x199   :  { %2453 = vmatpush1.bf16.msra.mxu0 %v3704_v43  ;;  %v3743_v43 = vld [vmem:[#allocation7 + $0x1c0] ss:$8 sps:$4 sm:$0xff]  }
 0x19a   :  { %2463 = vmatprep.subr.bf16.mxu0 %v3709_v44  ;;  %v372_v44 = vsub.s32 2, %v4074_v58  ;;  %v3774_v58 = vld [vmem:[#allocation10 + $0x18] sm:$0xff]  }
 0x19c   :  { %v373_v47 = vrot.slane %v4080_v60, %v372_v44  ;;  %v3770_v60 = vld [vmem:[#allocation8 + $0x38] sm:$0xff]  }
 0x19d   :  { %3183 = vmatpush3.bf16.msra.mxu1 %v3770_v60 }
 0x19e   :  { %3199 = vmatprep.subr.bf16.mxu1 %v3930_v62 }
 0x22f   :  { %v1847_v2 = vpop.f32.mrb[0].mxu0  ;;  %v4091_v3 = vpop.f32.mrb[0].mxu1 }
 0x230   :  { %v3219_v4 = vadd.f32 %v1847_v2, %v365_v63  ;;  %v1849_v5 = vpop.f32.mrb[1].mxu0  ;;  %v2013_v6 = vpop.f32.mrb[1].mxu1  ;;  %v3221_v50 = vadd.f32 %v4091_v3, %v373_v47  ;;  %v2090_v63 = vld [vmem:[%s4125_s4] sm:$0x3] }
 0x231   :  { %v3220_v7 = vadd.f32 %v1849_v5, %v369_v0  ;;  %v3222_v8 = vadd.f32 %v2013_v6, %v377_v1  ;;  %v1851_v9 = vpop.f32.mrb[2].mxu0  ;;  %v2015_v10 = vpop.f32.mrb[2].mxu1  ;;  %v2095_v0 = vrot.slane %v2090_v63, %v364_v59  ;;  %v2099_v1 = vrot.slane %v2090_v63, %v368_v61  ;;  %v3773_v59 = vld [vmem:[#allocation10 + $0x10] sm:$0xff]   ;;  %v3775_v61 = vld [vmem:[#allocation10 + $0x20] sm:$0xff]  }
 0x232   :  { %v2018_v12 = vmax.f32 %v3219_v4, 0.0  ;;  %v1852_v14 = vpop.f32.mrb[3].mxu0  ;;  %v2016_v15 = vpop.f32.mrb[3].mxu1  ;;  %v2020_v53 = vmax.f32 %v3221_v50, 0.0 }
 0x233   :  { %v2019_v16 = vmax.f32 %v3220_v7, 0.0  ;;  %v2021_v17 = vmax.f32 %v3222_v8, 0.0  ;;  %v3772_v15 = vld [vmem:[#allocation10 + $0x8] sm:$0xff]  }
 0x234   :  { %v2022_v20 = vpack.c.bf16 %v2018_v12, %v2018_v12  ;;  %v2024_v54 = vpack.c.bf16 %v2020_v53, %v2020_v53  ;;  %v3771_v12 = vld [vmem:[#allocation10] sm:$0xff]  }
 0x235   :  { %v2023_v18 = vpack.c.bf16 %v2019_v16, %v2019_v16  ;;  %v2025_v11 = vpack.c.bf16 %v2021_v17, %v2021_v17  ;;  %v3776_v16 = vld [vmem:[#allocation10 + $0x28] sm:$0xff]   ;;  %v3777_v17 = vld [vmem:[#allocation10 + $0x30] sm:$0xff]  }
 0x237   :  { %2454 = vmatprep.mubr.bf16.mxu0 %v2023_v18  ;;  %v3778_v18 = vld [vmem:[#allocation10 + $0x38] sm:$0xff]  }
 0x238   :  { %2455 = vmatmul.mubr.bf16.vlgmr.msra.gmra.mrb[4].mxu0 %v2022_v20  ;;  %v3142_v20 = vld [vmem:[%s4127_s6] ss:$0 sm:$0xff]  ;;  %s3889_s6 = scalar_lea.vmem %s2804_s13, 128 }
 0x239   :  { %2464 = vmatpush1.bf16.msra.mxu0 %v3707_v19  ;;  %2495 = vmatprep.mubr.bf16.mxu0 %v2025_v11  ;;  %p3890_p12 = scmp.ne.s32.totalorder %s2804_s13, %s3889_s6  ;;  %p3895_p0 = scmp.lt.s32.totalorder %s3889_s6, %s3889_s6 }
 0x23a   :  { %2465 = vmatprep.subr.bf16.mxu0 %v3712_v21 }
 0x23b   :  { %p3896_p1 = por %p3895_p0, %p3894_p13 }
 0x23d   :  { %2466 = vmatpush1.bf16.msra.mxu0 %v3710_v13  ;;  %p3897_p2 = pnand %p3896_p1, %p3890_p12 }
 0x23e   :  { %2467 = vmatprep.subr.bf16.mxu0 %v3715_v22 }
 0x241   :  { %2468 = vmatpush1.bf16.msra.mxu0 %v3713_v23 }
 0x242   :  { %2469 = vmatprep.subr.bf16.mxu0 %v3718_v24 }
 0x245   :  { %2470 = vmatpush1.bf16.msra.mxu0 %v3716_v25 }
 0x246   :  { %2471 = vmatprep.subr.bf16.mxu0 %v3721_v26  ;;  %v3159_v26 = vld [vmem:[%s4129_s8] ss:$0 sm:$0xff] }
 0x249   :  { %2472 = vmatpush1.bf16.msra.mxu0 %v3719_v27 }
 0x24a   :  { %2473 = vmatprep.subr.bf16.mxu0 %v3724_v28 }
 0x24d   :  { %2474 = vmatpush1.bf16.msra.mxu0 %v3722_v29 }
 0x24e   :  { %2475 = vmatprep.subr.bf16.mxu0 %v3727_v30 }
 0x251   :  { %2476 = vmatpush1.bf16.msra.mxu0 %v3725_v31 }
 0x252   :  { %2477 = vmatprep.subr.bf16.mxu0 %v3730_v32 }
 0x255   :  { %2478 = vmatpush1.bf16.msra.mxu0 %v3728_v33 }
 0x256   :  { %2479 = vmatprep.subr.bf16.mxu0 %v3733_v34 }
 0x259   :  { %2480 = vmatpush1.bf16.msra.mxu0 %v3731_v35 }
 0x25a   :  { %2481 = vmatprep.subr.bf16.mxu0 %v3736_v36 }
 0x25d   :  { %2482 = vmatpush1.bf16.msra.mxu0 %v3734_v37 }
 0x25e   :  { %2483 = vmatprep.subr.bf16.mxu0 %v3739_v38 }
 0x261   :  { %2484 = vmatpush1.bf16.msra.mxu0 %v3737_v39 }
 0x262   :  { %2485 = vmatprep.subr.bf16.mxu0 %v3742_v40 }
 0x265   :  { %2486 = vmatpush1.bf16.msra.mxu0 %v3740_v41 }
 0x266   :  { %2487 = vmatprep.subr.bf16.mxu0 %v3745_v42 }
 0x269   :  { %2488 = vmatpush1.bf16.msra.mxu0 %v3743_v43 }
 0x26a   :  { %2489 = vmatprep.subr.bf16.mxu0 %v3748_v45 }
 0x26d   :  { %2490 = vmatpush1.bf16.msra.mxu0 %v3746_v46 }
 0x26e   :  { %2491 = vmatprep.subr.bf16.mxu0 %v3751_v48 }
 0x271   :  { %2492 = vmatpush1.bf16.msra.mxu0 %v3749_v49 }
 0x272   :  { %2493 = vmatprep.subr.bf16.mxu0 %v3754_v51 }
 0x275   :  { %2494 = vmatpush1.bf16.msra.mxu0 %v3752_v52 }
 0x278   :  { %2496 = vmatmul.mubr.bf16.vlgmr.msra.gmra.mrb[4].mxu0 %v2024_v54 }
 0x34b   :  { %v2497_v2 = vpop.f32.mrb[4].mxu0 }
 0x34c   :  { %v3223_v3 = vadd.f32 %v2497_v2, %v2095_v0  ;;  %v2499_v4 = vpop.f32.mrb[5].mxu0 }
 0x34d   :  { %v3224_v5 = vadd.f32 %v2499_v4, %v2099_v1  ;;  %v2501_v6 = vpop.f32.mrb[6].mxu0 }
 0x34e   :  { %v2504_v7 = vmax.f32 %v3223_v3, 0.0  ;;  %v2502_v8 = vpop.f32.mrb[7].mxu0 }
 0x34f   :  { %v2505_v9 = vmax.f32 %v3224_v5, 0.0 }
 0x350   :  { %v2506_v14 = vpack.c.bf16 %v2504_v7, %v2504_v7 }
 0x351   :  { %v2507_v10 = vpack.c.bf16 %v2505_v9, %v2505_v9 }
 0x353   :  { %2675 = vmatprep.mubr.bf16.mxu1 %v2507_v10 }
 0x354   :  { %2676 = vmatmul.mubr.bf16.vlgmr.msra.gmra.mrb[4].mxu1 %v2506_v14 }
 0x355   :  { %3200 = vmatpush3.bf16.msra.mxu1 %v3771_v12  ;;  %3215 = vmatprep.mubr.msk.bf16.mxu1 %vm3931_vm0, %v3930_v62 }
 0x356   :  { %3201 = vmatprep.subr.bf16.mxu1 %v3930_v62 }
 0x359   :  { %3202 = vmatpush3.bf16.msra.mxu1 %v3772_v15 }
 0x35a   :  { %3203 = vmatprep.subr.bf16.mxu1 %v3930_v62 }
 0x35d   :  { %3204 = vmatpush3.bf16.msra.mxu1 %v3773_v59 }
 0x35e   :  { %3205 = vmatprep.subr.bf16.mxu1 %v3930_v62 }
 0x361   :  { %3206 = vmatpush3.bf16.msra.mxu1 %v3774_v58 }
 0x362   :  { %3207 = vmatprep.subr.bf16.mxu1 %v3930_v62 }
 0x365   :  { %3208 = vmatpush3.bf16.msra.mxu1 %v3775_v61 }
 0x366   :  { %3209 = vmatprep.subr.bf16.mxu1 %v3930_v62 }
 0x369   :  { %3210 = vmatpush3.bf16.msra.mxu1 %v3776_v16 }
 0x36a   :  { %3211 = vmatprep.subr.bf16.mxu1 %v3930_v62 }
 0x36d   :  { %3212 = vmatpush3.bf16.msra.mxu1 %v3777_v17 }
 0x36e   :  { %3213 = vmatprep.subr.bf16.mxu1 %v3930_v62 }
 0x371   :  { %3214 = vmatpush3.bf16.msra.mxu1 %v3778_v18 }
 0x427   :  { %v3184_v19 = vpop.f32.mrb[4].mxu1 }
 0x428   :  { %v3185_v21 = vpop.f32.mrb[5].mxu1 }
 0x429   :  { %v3186_v11 = vadd.f32 %v3185_v21, %v3184_v19  ;;  %v3187_v13 = vpop.f32.mrb[6].mxu1 }
 0x42a   :  { %v3188_v22 = vpop.f32.mrb[7].mxu1 }
 0x42b   :  { %v2678_v23 = vadd.f32 %v3186_v11, %v3142_v20 }
 0x42d   :  { %v2683_v24 = vmax.f32 %v2678_v23, 0.0 }
 0x42f   :  { %v2684_v25 = vpack.c.bf16 %v2683_v24, %v2683_v24 }
 0x431   :  { %3216 = vmatmul.mubr.bf16.vlgmr.msra.gmra.mrb[8].mxu1 %v2684_v25 }
 0x504   :  { %v2790_v27 = vpop.f32.mrb[8].mxu1 }
 0x505   :  { %v2791_v28 = vadd.f32 %v3159_v26, %v2790_v27  ;;  %v3217_v29 = vpop.f32.mrb[9].mxu1 }
 0x506   :  { %v2793_v30 = vpop.f32.mrb[10].mxu1 }
 0x507   :  { %2796 = vst [vmem:[#allocation11] sm:$0xff] %v2791_v28  ;;  %v3218_v31 = vpop.f32.mrb[11].mxu1 }
 0x508   :  { %3900 = shalt.err (!%p3897_p2)
}
 0x509   :  { %s3901_s8 = scalar_lea.hbm %s4130_s9, 128 }
 0x50a   :  { %p3902_p3 = scmp.ne.s32.totalorder %s4130_s9, %s3901_s8  ;;  %p3905_p4 = scmp.lt.u32.totalorder %s3901_s8, %s4130_s9 }
 0x50c   :  { %p3907_p5 = pnand %p3905_p4, %p3902_p3 }
 0x50e   :  { %3910 = shalt.err (!%p3907_p5)
}
 0x50f   :  { %2806 = dma.vmem_to_hbm [thread:$0]  %s2804_s13, 128, %s4130_s9, [#allocation4]  }
 0x510   :  { %3917 = dma.done.wait [#allocation4], 128  }
 0x511   :  { %3918 = vsyncadd [#allocation4], 4294967168 }
 0x512   :  { %2810 = vsyncpa [#allocation3], 1 }
 0x513   :  { %2811 = vsyncpa [#allocation6], 1 }
 0x514   :  { %2812 = vsyncpa [#allocation9], 1 }
 0x515   :  { %2813 = vsyncpa [#allocation4], 1 }

</bundles_post_ra>
